<compile_context>
chip_gen: v7x
topology: tpu7x:2x2x1
jax: 0.10.0
libtpu: 0.0.40
codegen_flags: <defaults>
</compile_context>

<pallas_src>
import math

import jax
import jax.numpy as jnp
from jax.experimental import pallas as pl
from jax.experimental.pallas import tpu as pltpu

TIMESTEPS = 500
NUM_CLASSES = 4
HIDDEN = 32


def _ridiffusion_kernel(x_ref, sc_ref, w1t_ref, wt_ref, b1_ref, w2t_ref, b2_ref,
                        pred_ref, loss_ref):
    # Lane-major: per-node streams run along the 128-lane axis (T = tile_n lanes).
    x = x_ref[...]                                   # (C, T) data.x (one-hot / soft targets)
    sc = sc_ref[...]                                 # (3, T) rows = [alpha_bar, uniform, t]
    a = sc[0:1, :]
    u = sc[1:2, :]
    t = sc[2:3, :]

    # --- apply_noise: prob_X = Qtb[batch] @ x, Qtb = a*I + (1-a)/K * 11^T ---
    s = jnp.sum(x, axis=0, keepdims=True)                        # (1, T)
    prob = a * x + (1.0 - a) * (s * (1.0 / NUM_CLASSES))         # (C, T)

    # multinomial(1) via inverse CDF; one-hot built straight from the compares.
    total = jnp.sum(prob, axis=0, keepdims=True)                 # (1, T)
    uu = u * total
    c0 = prob[0:1, :]
    c1 = c0 + prob[1:2, :]
    c2 = c1 + prob[2:3, :]
    ge0 = (uu >= c0).astype(jnp.float32)
    ge1 = (uu >= c1).astype(jnp.float32)
    ge2 = (uu >= c2).astype(jnp.float32)
    onehot = jnp.concatenate([1.0 - ge0, ge0 - ge1, ge1 - ge2, ge2], axis=0)  # (C, T)

    # --- model(noise_data, t): time-conditioned 2-layer MLP, both layers on MXU ---
    w1t = w1t_ref[...]                               # (H, C)
    wt = wt_ref[...]                                 # (H, 1)
    b1 = b1_ref[...]                                 # (H, 1)
    w2t = w2t_ref[...]                               # (C, H)
    b2 = b2_ref[...]                                 # (C, 1)

    h = jnp.dot(w1t, onehot, preferred_element_type=jnp.float32) + t * wt + b1   # (H, T)
    h = jnp.maximum(h, 0.0)
    pred = jnp.dot(w2t, h, preferred_element_type=jnp.float32) + b2              # (C, T)
    pred_ref[...] = pred

    # --- F.cross_entropy(pred, data.x), soft targets; emit per-tile partial sum ---
    m = jnp.max(pred, axis=0, keepdims=True)
    z = pred - m
    lse = jnp.log(jnp.sum(jnp.exp(z), axis=0, keepdims=True))
    logp = z - lse
    per_node = -jnp.sum(x * logp, axis=0, keepdims=True)         # (1, T)
    tile_sum = jnp.sum(per_node, axis=1, keepdims=True)          # (1, 1)
    loss_ref[...] = jnp.broadcast_to(tile_sum[None], (1, 1, 128))


def ridiffusion_forward(x_cn, scalars_cn, params, *, tile_n=8192):
    """x_cn: (C, N) lane-major data.x; scalars_cn: (3, N) = [alpha_bar, u, t].

    Returns (loss_scalar, pred_logits (N, C))."""
    C, N = x_cn.shape
    assert C == NUM_CLASSES
    w1t, wt, b1, w2t, b2 = params
    H = w1t.shape[0]

    tile_n = min(tile_n, N)
    # Keep >= 2 grid steps when possible so the "parallel" axis can shard across
    # both TensorCores on v7x (on v5e/v6e the grid is just a serial loop).
    if tile_n == N and N >= 256 and N % 256 == 0:
        tile_n = N // 2
    assert N % tile_n == 0 and tile_n % 128 == 0, "N must tile into multiples of 128"
    num_tiles = N // tile_n

    # Lane-dense tiles: x/scalars/pred each pad to 8 sublanes x tile_n lanes x 4 B,
    # double-buffered by the pipeline.
    per_step_bytes = 3 * 8 * tile_n * 4 * 2
    vmem_limit = int(min(max(per_step_bytes + (2 << 20), 4 << 20), 32 << 20))

    weight_bytes = 4 * (w1t.size + wt.size + b1.size + w2t.size + b2.size)
    cost = pl.CostEstimate(
        flops=int(N * (4 * H * C + 48)),
        transcendentals=int(N * (C + 1)),                  # exp (softmax) + log
        bytes_accessed=int(N * 4 * (2 * C + 3) + num_tiles * 128 * 4 + weight_bytes),
    )

    pred_cn, loss_tiles = pl.pallas_call(
        _ridiffusion_kernel,
        out_shape=(jax.ShapeDtypeStruct((C, N), jnp.float32),
                   jax.ShapeDtypeStruct((num_tiles, 1, 128), jnp.float32)),
        grid_spec=pltpu.PrefetchScalarGridSpec(
            num_scalar_prefetch=0,
            grid=(num_tiles,),
            in_specs=[
                pl.BlockSpec((C, tile_n), lambda i: (0, i)),    # data.x, lane-major
                pl.BlockSpec((3, tile_n), lambda i: (0, i)),    # [alpha_bar, u, t]
                pl.BlockSpec((H, C), lambda i: (0, 0)),         # W1^T  (VMEM-resident)
                pl.BlockSpec((H, 1), lambda i: (0, 0)),         # Wt
                pl.BlockSpec((H, 1), lambda i: (0, 0)),         # b1
                pl.BlockSpec((C, H), lambda i: (0, 0)),         # W2^T
                pl.BlockSpec((C, 1), lambda i: (0, 0)),         # b2
            ],
            out_specs=[
                pl.BlockSpec((C, tile_n), lambda i: (0, i)),    # pred logits (C, N)
                pl.BlockSpec((1, 1, 128), lambda i: (i, 0, 0)), # per-tile CE loss sum
            ],
        ),
        compiler_params=pltpu.CompilerParams(
            dimension_semantics=("parallel",),
            vmem_limit_bytes=vmem_limit),
        cost_estimate=cost,
    )(x_cn, scalars_cn, w1t, wt, b1, w2t, b2)

    loss = jnp.sum(loss_tiles[:, 0, 0]) / N                 # reduction='mean'
    return loss, pred_cn.T                                  # (N, C) natural layout


def cosine_alpha_bar(t_norm, s=0.008):
    # standard cosine noise schedule alpha_bar(t)
    f = jnp.cos((t_norm + s) / (1.0 + s) * jnp.pi / 2.0) ** 2
    f0 = math.cos(s / (1.0 + s) * math.pi / 2.0) ** 2
    return f / f0


def _reference(x_cn, sc, params):
    # Pure-JAX reference of the same forward pass (for correctness checking).
    w1t, wt, b1, w2t, b2 = params
    a, u, t = sc[0:1], sc[1:2], sc[2:3]
    s = x_cn.sum(0, keepdims=True)
    prob = a * x_cn + (1.0 - a) * s / NUM_CLASSES
    uu = u * prob.sum(0, keepdims=True)
    c0 = prob[0:1]
    c1 = c0 + prob[1:2]
    c2 = c1 + prob[2:3]
    ge0 = (uu >= c0).astype(jnp.float32)
    ge1 = (uu >= c1).astype(jnp.float32)
    ge2 = (uu >= c2).astype(jnp.float32)
    onehot = jnp.concatenate([1.0 - ge0, ge0 - ge1, ge1 - ge2, ge2], axis=0)
    h = jnp.maximum(w1t @ onehot + t * wt + b1, 0.0)
    pred = w2t @ h + b2
    logp = jax.nn.log_softmax(pred, axis=0)
    loss = -(x_cn * logp).sum() / x_cn.shape[1]
    return loss, pred.T


if __name__ == "__main__":
    key = jax.random.PRNGKey(0)
    k_cls, k_t, k_u, k_w1, k_wt, k_w2 = jax.random.split(key, 6)

    N = 2048  # total graph nodes in the batch (small, but exercises a 2-step grid)
    B = 2     # number of graphs (data.batch[-1] + 1)
    batch = jnp.repeat(jnp.arange(B), N // B)            # (N,) graph id per node

    # data.x : one-hot amino-acid classes, built lane-major as (C, N)
    classes = jax.random.randint(k_cls, (N,), 0, NUM_CLASSES)
    x_cn = jax.nn.one_hot(classes, NUM_CLASSES, dtype=jnp.float32, axis=0)   # (4, N)

    # t_int ~ U{0..timesteps} per graph, like torch.randint(0, T+1, (B,1)).float()
    t_int = jax.random.randint(k_t, (B,), 0, TIMESTEPS + 1).astype(jnp.float32)
    alpha_bar = cosine_alpha_bar(t_int / TIMESTEPS)      # (B,)

    alpha_node = alpha_bar[batch]                        # (N,) Qtb gather by data.batch
    t_node = t_int[batch]                                # (N,) time fed to the model
    u_node = jax.random.uniform(k_u, (N,), dtype=jnp.float32)   # multinomial randoms
    scalars_cn = jnp.stack([alpha_node, u_node, t_node], axis=0)   # (3, N) lane-major

    # deterministic model parameters (2-layer MLP, hidden=32), stored lane-major
    w1t = 0.1 * jax.random.normal(k_w1, (HIDDEN, NUM_CLASSES), dtype=jnp.float32)
    wt = 0.01 * jax.random.normal(k_wt, (HIDDEN, 1), dtype=jnp.float32)
    b1 = jnp.zeros((HIDDEN, 1), dtype=jnp.float32)
    w2t = 0.1 * jax.random.normal(k_w2, (NUM_CLASSES, HIDDEN), dtype=jnp.float32)
    b2 = jnp.zeros((NUM_CLASSES, 1), dtype=jnp.float32)
    params = (w1t, wt, b1, w2t, b2)

    loss, pred = ridiffusion_forward(x_cn, scalars_cn, params)   # grid of 2 tiles
    jax.block_until_ready((loss, pred))

    loss_r, pred_r = _reference(x_cn, scalars_cn, params)
    assert pred.shape == (N, NUM_CLASSES)
    assert bool(jnp.isfinite(loss))
    assert bool(jnp.allclose(pred, pred_r, rtol=1e-5, atol=1e-5))
    assert bool(jnp.allclose(loss, loss_r, rtol=1e-5, atol=1e-5))
    print("KERNEL_OK")
</pallas_src>

<mosaic_0001>
module attributes {stable_mosaic.version = 11 : i64} {
  func.func @_ridiffusion_kernel(%arg0: i32, %arg1: memref<4x1024xf32, #tpu.memory_space<vmem>>, %arg2: memref<3x1024xf32, #tpu.memory_space<vmem>>, %arg3: memref<32x4xf32, #tpu.memory_space<vmem>>, %arg4: memref<32x1xf32, #tpu.memory_space<vmem>>, %arg5: memref<32x1xf32, #tpu.memory_space<vmem>>, %arg6: memref<4x32xf32, #tpu.memory_space<vmem>>, %arg7: memref<4x1xf32, #tpu.memory_space<vmem>>, %arg8: memref<4x1024xf32, #tpu.memory_space<vmem>>, %arg9: memref<1x1x128xf32, #tpu.memory_space<vmem>>) attributes {dimension_semantics = [#tpu.dimension_semantics<parallel>], iteration_bounds = array<i64: 2>, scalar_prefetch = 0 : i64, scratch_operands = 0 : i64, tpu.core_type = #tpu.core_type<tc>, window_params = [{transform_indices = @transform_0, window_bounds = array<i64: 4, 1024>}, {transform_indices = @transform_1, window_bounds = array<i64: 3, 1024>}, {pipeline_mode = #tpu.pipeline_mode<synchronous>, transform_indices = @transform_2, window_bounds = array<i64: 32, 4>}, {pipeline_mode = #tpu.pipeline_mode<synchronous>, transform_indices = @transform_3, window_bounds = array<i64: 32, 1>}, {pipeline_mode = #tpu.pipeline_mode<synchronous>, transform_indices = @transform_4, window_bounds = array<i64: 32, 1>}, {pipeline_mode = #tpu.pipeline_mode<synchronous>, transform_indices = @transform_5, window_bounds = array<i64: 4, 32>}, {pipeline_mode = #tpu.pipeline_mode<synchronous>, transform_indices = @transform_6, window_bounds = array<i64: 4, 1>}, {transform_indices = @transform_7, window_bounds = array<i64: 4, 1024>}, {transform_indices = @transform_8, window_bounds = array<i64: 1, 1, 128>}]} {
    %c0 = arith.constant 0 : index
    %c0_0 = arith.constant 0 : index
    %0 = vector.load %arg1[%c0, %c0_0] : memref<4x1024xf32, #tpu.memory_space<vmem>>, vector<4x1024xf32>
    %c0_1 = arith.constant 0 : index
    %c0_2 = arith.constant 0 : index
    %1 = vector.load %arg2[%c0_1, %c0_2] : memref<3x1024xf32, #tpu.memory_space<vmem>>, vector<3x1024xf32>
    %2 = vector.extract_strided_slice %1 {offsets = [0, 0], sizes = [1, 1024], strides = [1, 1]} : vector<3x1024xf32> to vector<1x1024xf32>
    %3 = vector.extract_strided_slice %1 {offsets = [1, 0], sizes = [1, 1024], strides = [1, 1]} : vector<3x1024xf32> to vector<1x1024xf32>
    %4 = vector.extract_strided_slice %1 {offsets = [2, 0], sizes = [1, 1024], strides = [1, 1]} : vector<3x1024xf32> to vector<1x1024xf32>
    %cst = arith.constant dense<0.000000e+00> : vector<1024xf32>
    %5 = vector.multi_reduction <add>, %0, %cst [0] : vector<4x1024xf32> to vector<1024xf32>
    %6 = vector.shape_cast %5 : vector<1024xf32> to vector<1x1024xf32>
    %7 = vector.broadcast %2 : vector<1x1024xf32> to vector<4x1024xf32>
    %8 = arith.mulf %7, %0 : vector<4x1024xf32>
    %cst_3 = arith.constant 1.000000e+00 : f32
    %9 = vector.broadcast %cst_3 : f32 to vector<1x1024xf32>
    %10 = arith.subf %9, %2 : vector<1x1024xf32>
    %cst_4 = arith.constant 2.500000e-01 : f32
    %11 = vector.broadcast %cst_4 : f32 to vector<1x1024xf32>
    %12 = arith.mulf %6, %11 : vector<1x1024xf32>
    %13 = arith.mulf %10, %12 : vector<1x1024xf32>
    %14 = vector.broadcast %13 : vector<1x1024xf32> to vector<4x1024xf32>
    %15 = arith.addf %8, %14 : vector<4x1024xf32>
    %cst_5 = arith.constant dense<0.000000e+00> : vector<1024xf32>
    %16 = vector.multi_reduction <add>, %15, %cst_5 [0] : vector<4x1024xf32> to vector<1024xf32>
    %17 = vector.shape_cast %16 : vector<1024xf32> to vector<1x1024xf32>
    %18 = arith.mulf %3, %17 : vector<1x1024xf32>
    %19 = vector.extract_strided_slice %15 {offsets = [0, 0], sizes = [1, 1024], strides = [1, 1]} : vector<4x1024xf32> to vector<1x1024xf32>
    %20 = vector.extract_strided_slice %15 {offsets = [1, 0], sizes = [1, 1024], strides = [1, 1]} : vector<4x1024xf32> to vector<1x1024xf32>
    %21 = arith.addf %19, %20 : vector<1x1024xf32>
    %22 = vector.extract_strided_slice %15 {offsets = [2, 0], sizes = [1, 1024], strides = [1, 1]} : vector<4x1024xf32> to vector<1x1024xf32>
    %23 = arith.addf %21, %22 : vector<1x1024xf32>
    %24 = arith.cmpf oge, %18, %19 : vector<1x1024xf32>
    %25 = arith.extui %24 : vector<1x1024xi1> to vector<1x1024xi32>
    %26 = arith.sitofp %25 : vector<1x1024xi32> to vector<1x1024xf32>
    %27 = arith.cmpf oge, %18, %21 : vector<1x1024xf32>
    %28 = arith.extui %27 : vector<1x1024xi1> to vector<1x1024xi32>
    %29 = arith.sitofp %28 : vector<1x1024xi32> to vector<1x1024xf32>
    %30 = arith.cmpf oge, %18, %23 : vector<1x1024xf32>
    %31 = arith.extui %30 : vector<1x1024xi1> to vector<1x1024xi32>
    %32 = arith.sitofp %31 : vector<1x1024xi32> to vector<1x1024xf32>
    %cst_6 = arith.constant 1.000000e+00 : f32
    %33 = vector.broadcast %cst_6 : f32 to vector<1x1024xf32>
    %34 = arith.subf %33, %26 : vector<1x1024xf32>
    %35 = arith.subf %26, %29 : vector<1x1024xf32>
    %36 = arith.subf %29, %32 : vector<1x1024xf32>
    %37 = tpu.concatenate %34, %35, %36, %32 in 0 : vector<1x1024xf32>, vector<1x1024xf32>, vector<1x1024xf32>, vector<1x1024xf32> -> vector<4x1024xf32>
    %c0_7 = arith.constant 0 : index
    %c0_8 = arith.constant 0 : index
    %38 = vector.load %arg3[%c0_7, %c0_8] : memref<32x4xf32, #tpu.memory_space<vmem>>, vector<32x4xf32>
    %c0_9 = arith.constant 0 : index
    %c0_10 = arith.constant 0 : index
    %39 = vector.load %arg4[%c0_9, %c0_10] : memref<32x1xf32, #tpu.memory_space<vmem>>, vector<32x1xf32>
    %c0_11 = arith.constant 0 : index
    %c0_12 = arith.constant 0 : index
    %40 = vector.load %arg5[%c0_11, %c0_12] : memref<32x1xf32, #tpu.memory_space<vmem>>, vector<32x1xf32>
    %c0_13 = arith.constant 0 : index
    %c0_14 = arith.constant 0 : index
    %41 = vector.load %arg6[%c0_13, %c0_14] : memref<4x32xf32, #tpu.memory_space<vmem>>, vector<4x32xf32>
    %c0_15 = arith.constant 0 : index
    %c0_16 = arith.constant 0 : index
    %42 = vector.load %arg7[%c0_15, %c0_16] : memref<4x1xf32, #tpu.memory_space<vmem>>, vector<4x1xf32>
    %cst_17 = arith.constant dense<0.000000e+00> : vector<32x1024xf32>
    %43 = tpu.matmul %38, %37, %cst_17 {dimension_numbers = #tpu.dot_dimension_numbers<[1], [0], [0], [1], [0, 0, 1, 1], [], []>} : vector<32x4xf32>, vector<4x1024xf32>, vector<32x1024xf32> -> vector<32x1024xf32>
    %44 = vector.broadcast %4 : vector<1x1024xf32> to vector<32x1024xf32>
    %45 = vector.broadcast %39 : vector<32x1xf32> to vector<32x1024xf32>
    %46 = arith.mulf %44, %45 : vector<32x1024xf32>
    %47 = arith.addf %43, %46 : vector<32x1024xf32>
    %48 = vector.broadcast %40 : vector<32x1xf32> to vector<32x1024xf32>
    %49 = arith.addf %47, %48 : vector<32x1024xf32>
    %cst_18 = arith.constant 0.000000e+00 : f32
    %50 = vector.broadcast %cst_18 : f32 to vector<32x1024xf32>
    %51 = arith.maximumf %49, %50 : vector<32x1024xf32>
    %cst_19 = arith.constant dense<0.000000e+00> : vector<4x1024xf32>
    %52 = tpu.matmul %41, %51, %cst_19 {dimension_numbers = #tpu.dot_dimension_numbers<[1], [0], [0], [1], [0, 0, 1, 1], [], []>} : vector<4x32xf32>, vector<32x1024xf32>, vector<4x1024xf32> -> vector<4x1024xf32>
    %53 = vector.broadcast %42 : vector<4x1xf32> to vector<4x1024xf32>
    %54 = arith.addf %52, %53 : vector<4x1024xf32>
    %c0_20 = arith.constant 0 : index
    %c0_21 = arith.constant 0 : index
    %55 = vector.load %arg8[%c0_20, %c0_21] : memref<4x1024xf32, #tpu.memory_space<vmem>>, vector<4x1024xf32>
    tpu.vector_store %arg8[%c0_20, %c0_21], %54 {strides = array<i32>} : memref<4x1024xf32, #tpu.memory_space<vmem>>, vector<4x1024xf32>,
    %cst_22 = arith.constant dense<0xFF800000> : vector<1024xf32>
    %56 = vector.multi_reduction <maximumf>, %54, %cst_22 [0] : vector<4x1024xf32> to vector<1024xf32>
    %57 = vector.shape_cast %56 : vector<1024xf32> to vector<1x1024xf32>
    %58 = vector.broadcast %57 : vector<1x1024xf32> to vector<4x1024xf32>
    %59 = arith.subf %54, %58 : vector<4x1024xf32>
    %60 = math.exp %59 : vector<4x1024xf32>
    %cst_23 = arith.constant dense<0.000000e+00> : vector<1024xf32>
    %61 = vector.multi_reduction <add>, %60, %cst_23 [0] : vector<4x1024xf32> to vector<1024xf32>
    %62 = vector.shape_cast %61 : vector<1024xf32> to vector<1x1024xf32>
    %63 = math.log %62 : vector<1x1024xf32>
    %64 = vector.broadcast %63 : vector<1x1024xf32> to vector<4x1024xf32>
    %65 = arith.subf %59, %64 : vector<4x1024xf32>
    %66 = arith.mulf %0, %65 : vector<4x1024xf32>
    %cst_24 = arith.constant dense<0.000000e+00> : vector<1024xf32>
    %67 = vector.multi_reduction <add>, %66, %cst_24 [0] : vector<4x1024xf32> to vector<1024xf32>
    %68 = vector.shape_cast %67 : vector<1024xf32> to vector<1x1024xf32>
    %cst_25 = arith.constant 0.000000e+00 : f32
    %69 = vector.broadcast %cst_25 : f32 to vector<1x1024xf32>
    %70 = arith.subf %69, %68 : vector<1x1024xf32>
    %cst_26 = arith.constant dense<0.000000e+00> : vector<1xf32>
    %71 = vector.multi_reduction <add>, %70, %cst_26 [1] : vector<1x1024xf32> to vector<1xf32>
    %72 = vector.shape_cast %71 : vector<1xf32> to vector<1x1xf32>
    %73 = vector.shape_cast %72 : vector<1x1xf32> to vector<1x1x1xf32>
    %74 = vector.shape_cast %73 : vector<1x1x1xf32> to vector<1x1x1xf32>
    %75 = vector.broadcast %74 : vector<1x1x1xf32> to vector<1x1x128xf32>
    %c0_27 = arith.constant 0 : index
    %c0_28 = arith.constant 0 : index
    %c0_29 = arith.constant 0 : index
    %76 = vector.load %arg9[%c0_27, %c0_28, %c0_29] : memref<1x1x128xf32, #tpu.memory_space<vmem>>, vector<1x1x128xf32>
    tpu.vector_store %arg9[%c0_27, %c0_28, %c0_29], %75 {strides = array<i32>} : memref<1x1x128xf32, #tpu.memory_space<vmem>>, vector<1x1x128xf32>,
    return
  }
  func.func @transform_0(%arg0: i32) -> (i32, i32) {
    %c0_i32 = arith.constant 0 : i32
    %c0_i32_0 = arith.constant 0 : i32
    return %c0_i32, %arg0 : i32, i32
  }
  func.func @transform_1(%arg0: i32) -> (i32, i32) {
    %c0_i32 = arith.constant 0 : i32
    %c0_i32_0 = arith.constant 0 : i32
    return %c0_i32, %arg0 : i32, i32
  }
  func.func @transform_2(%arg0: i32) -> (i32, i32) {
    %c0_i32 = arith.constant 0 : i32
    %c0_i32_0 = arith.constant 0 : i32
    %c0_i32_1 = arith.constant 0 : i32
    return %c0_i32, %c0_i32_0 : i32, i32
  }
  func.func @transform_3(%arg0: i32) -> (i32, i32) {
    %c0_i32 = arith.constant 0 : i32
    %c0_i32_0 = arith.constant 0 : i32
    %c0_i32_1 = arith.constant 0 : i32
    return %c0_i32, %c0_i32_0 : i32, i32
  }
  func.func @transform_4(%arg0: i32) -> (i32, i32) {
    %c0_i32 = arith.constant 0 : i32
    %c0_i32_0 = arith.constant 0 : i32
    %c0_i32_1 = arith.constant 0 : i32
    return %c0_i32, %c0_i32_0 : i32, i32
  }
  func.func @transform_5(%arg0: i32) -> (i32, i32) {
    %c0_i32 = arith.constant 0 : i32
    %c0_i32_0 = arith.constant 0 : i32
    %c0_i32_1 = arith.constant 0 : i32
    return %c0_i32, %c0_i32_0 : i32, i32
  }
  func.func @transform_6(%arg0: i32) -> (i32, i32) {
    %c0_i32 = arith.constant 0 : i32
    %c0_i32_0 = arith.constant 0 : i32
    %c0_i32_1 = arith.constant 0 : i32
    return %c0_i32, %c0_i32_0 : i32, i32
  }
  func.func @transform_7(%arg0: i32) -> (i32, i32) {
    %c0_i32 = arith.constant 0 : i32
    %c0_i32_0 = arith.constant 0 : i32
    return %c0_i32, %arg0 : i32, i32
  }
  func.func @transform_8(%arg0: i32) -> (i32, i32, i32) {
    %c0_i32 = arith.constant 0 : i32
    %c0_i32_0 = arith.constant 0 : i32
    %c0_i32_1 = arith.constant 0 : i32
    return %arg0, %c0_i32, %c0_i32_0 : i32, i32, i32
  }
}

</mosaic_0001>

<bundles_post_ra>
// kernel: tpu_custom_call.1
= control target key start
LH: loop header
LB: loop body
LE: loop exit
PB: predicated region body
PF: predicated region fallthrough
CT: control target
= control target key end

     0   :  { %14 = vsyncpa [#allocation3], 0  ;;  %s3537_s0 = inlined_call_operand.vmem [shape: f32[4,2048], index: 0, kind: input, shape index: {}]   ;;  %s3538_s1 = inlined_call_operand.hbm [shape: f32[3,2048], index: 1, kind: input, shape index: {}]   ;;  %s3539_s2 = inlined_call_operand.vmem [shape: f32[32,4], index: 2, kind: input, shape index: {}]   ;;  %s3540_s3 = inlined_call_operand.vmem [shape: f32[32,1], index: 3, kind: input, shape index: {}]   ;;  %s3541_s4 = inlined_call_operand.vmem [shape: f32[32,1], index: 4, kind: input, shape index: {}]   ;;  %s3542_s5 = inlined_call_operand.vmem [shape: f32[4,32], index: 5, kind: input, shape index: {}]   ;;  %s3543_s6 = inlined_call_operand.vmem [shape: f32[4,1], index: 6, kind: input, shape index: {}]   ;;  %s3544_s7 = inlined_call_operand.hbm [shape: f32[4,2048], index: 7, kind: output, shape index: {0}]   ;;  %s3545_s8 = inlined_call_operand.hbm [shape: f32[2,1,128], index: 8, kind: output, shape index: {1}]  }
   0x1   :  { %16 = vsyncpa [#allocation3 + $0x1], 0 }
   0x2   :  { %17 = vsyncpa [#allocation4], 0 }
   0x3   :  { %19 = vsyncpa [#allocation4 + $0x1], 0 }
   0x4   :  { %20 = vsyncpa [#allocation7], 0 }
   0x5   :  { %22 = vsyncpa [#allocation7 + $0x1], 0  ;;  %s2774_s27 = smov 0   ;;  %s2776_s28 = smov 0  }
   0x6   :  { %s2778_s29 = smov 0   ;;  %s2780_s30 = smov 0  }
   0x7 LB: > { %s2795_s9 = sadd.s32 4294967295, %s2722_s30   ;;  %s2408_s10 = sadd.s32 4294967294, %s2722_s30   ;;  %s2722_s30 = sphi %s2780_s30, %s3560_s30   ;;  %s2718_s29 = sphi %s2778_s29, %s3559_s29   ;;  %s2714_s28 = sphi %s2776_s28, %s3558_s28   ;;  %s2710_s27 = sphi %s2774_s27, %s3557_s27  }
   0x8   : > { %s2799_s11 = sadd.s32 1, %s2722_s30   ;;  %s61_s12 = sadd.s32 1, %s2718_s29 }
   0x9   : > { %s58_s13 = ssub.s32 %s2722_s30, %s2799_s11  ;;  %p68_p0 = scmp.ne.s32.totalorder %s2718_s29, %s2714_s28 }
   0xa   : > { %p59_p1 = scmp.eq.s32.totalorder %s58_s13, 0  ;;  %p69_p2 = scmp.eq.s32.totalorder %s2722_s30, 0 }
   0xb   : > { %p74_p3 = scmp.ne.s32.totalorder %s2714_s28, %s2710_s27  ;;  %p75_p4 = scmp.eq.s32.totalorder %s2795_s9, 0 }
   0xc   : > { %s2811_s14 = scalar_select %p59_p1, %s2718_s29, %s61_s12  }
   0xd   : > { %p2813_p5 = por %p69_p2, %p68_p0  ;;  %p2817_p6 = por %p75_p4, %p74_p3 }
   0xe   : > { %p203_p7 = scmp.eq.s32.totalorder %s2795_s9, 1  ;;  %p209_p8 = scmp.eq.s32.totalorder %s2408_s10, 1 }
   0xf   : > { %p2516_p10 = scmp.lt.s32.totalorder %s2722_s30, 2  ;;  %s279_s19 = sand.u32 1, %s2718_s29  }
  0x10   : > { %p2824_p11 = por %p203_p7, %p68_p0  ;;  %p2828_p12 = por %p209_p8, %p74_p3 }
  0x11   : > { %s2465_s20 = sshll.u32 %s2722_s30, 9  ;;  %s2411_s21 = sshll.u32 %s279_s19, 5 }
  0x12   : > { %s3549_s17 = scalar_select %p2824_p11, 1, 0 }
  0x13   : > { %s3550_s18 = scalar_select %p2828_p12, 1, 0 }
  0x14   : > { %s2837_s24 = scalar_lea.hbm %s3538_s1, %s2465_s20  ;;  %s283_s25 = scalar_lea.vmem [#allocation2], %s2411_s21 }
  0x15   : > { %s291_s26 = sshll.u32 %s283_s25, 4  ;;  %p2841_p13 = pnand %p2516_p10, %p2813_p5  ;;  %s2845_s26 = int_to_ptr.vmem [resolvable:$true] %s291_s26 }
  0x16   : > { %s280_s12 = scalar_lea.sflag [#allocation3], %s279_s19  ;;  %s2594_s13 = scalar_lea.hbm %s2837_s24, 512 }
  0x17   : > { %p2595_p2 = scmp.ne.s32.totalorder %s2837_s24, %s2594_s13  ;;  %p2596_p3 = pneg %p2841_p13 }
  0x18   : > { %s2599_s21 = scalar_lea.hbm %s3538_s1, 1024  ;;  %p2600_p5 = scmp.lt.u32.totalorder %s2837_s24, %s3538_s1 }
  0x19   : > { %p2597_p4 = pnand %p2596_p3, %p2595_p2  ;;  %p2601_p8 = scmp.lt.u32.totalorder %s2599_s21, %s2594_s13 }
  0x1a   : > { %p2603_p9 = scmp.lt.u32.totalorder %s2594_s13, %s2837_s24 }
  0x1b   : > { %p2598_p7 = pneg %p2597_p4  ;;  %p2602_p10 = por %p2601_p8, %p2600_p5 }
  0x1d   : > { %p2604_p0 = por %p2603_p9, %p2602_p10 }
  0x1f   : > { %p2605_p1 = pnand %p2604_p0, %p2598_p7 }
  0x21   : > { %2608 = shalt.err (!%p2605_p1)
}
  0x22   : > { %s2609_s19 = scalar_lea.vmem %s2845_s26, 512  ;;  %s2724_s25 = smov [#allocation2]  }
  0x23   : > { %p2610_p2 = scmp.ne.s32.totalorder %s2845_s26, %s2609_s19  ;;  %s2614_s15 = sshll.u32 %s2724_s25, 4  ;;  %s2615_s15 = int_to_ptr.vmem [resolvable:$false] %s2614_s15 }
  0x24   : > { %s2616_s20 = scalar_lea.vmem %s2615_s15, 1024  ;;  %p2617_p11 = scmp.lt.s32.totalorder %s2845_s26, %s2615_s15 }
  0x25   : > { %p2612_p4 = pnand %p2610_p2, %p2596_p3  ;;  %p2618_p5 = scmp.lt.s32.totalorder %s2616_s20, %s2609_s19 }
  0x27   : > { %p2613_p12 = pneg %p2612_p4  ;;  %p2619_p8 = por %p2618_p5, %p2617_p11 }
  0x29   : > { %p2620_p9 = pnand %p2619_p8, %p2613_p12 }
  0x2b   : > { %2623 = shalt.err (!%p2620_p9)
}
  0x2c   : > { %2508 = dma.hbm_to_vmem [thread:$0]  (!%p2841_p13), %s2837_s24, 512, %s2845_s26, %s280_s12  }
  0x2d   : > { %p3552_p0 = scmp.lt.s32.totalorder %s2722_s30, 3  ;;  %p3553_p1 = scmp.ge.s32.totalorder %s2722_s30, 1 }
  0x2f   : > { %p297_p3 = pnand %p3553_p1, %p3552_p0 }
  0x30   : > { %s2879_s13 = sand.u32 (!%p297_p3), 1, %s2714_s28  }
  0x31   : > { %300 = sbr.rel (%p297_p3) target bundleno = 854 (0x356), region = 48  ;;  %s2415_s21 = sshll.u32 (!%p297_p3), %s2879_s13, 5 }
  0x32   : > { %s303_s22 = scalar_lea.sflag (!%p297_p3), [#allocation3], %s2879_s13  ;;  %s2885_s10 = scalar_lea.vmem (!%p297_p3), [#allocation2], %s2415_s21 }
  0x38   : > { %2697 = dma.done.wait (%p2817_p6), %s303_s22, 512  }
  0x39   : > { %2699 = vsyncadd (%p2817_p6), %s303_s22, 4294966784  ;;  %s2417_s24 = sshll.u32 %s2795_s9, 3  ;;  %v437_v0 = vlaneseq  ;;  %v2725_v1 = vmov 0.0   ;;  %v2726_v3 = vmov 0   ;;  %vm376_vm0 = vcmask 1043456   ;;  %v1076_v24 = vld [vmem:[%s3540_s3] sm:$0xff] }
  0x3a   : > { %p349_p11 = scmp.lt.s32.totalorder %s2417_s24, 15  ;;  %1311 = vmatprep.mubr.f32.mxu0 %v2725_v1  ;;  %1400 = vmatprep.mubr.f32.mxu1 %v2725_v1  ;;  %v2909_v7 = vld [vmem:[%s2885_s10] sm:$0x77]  ;;  %v1078_v25 = vld [vmem:[%s3540_s3 + $0x10] sm:$0xff]  ;;  %v2946_v28 = vld [vmem:[%s2885_s10 + $0x8] sm:$0x77] }
  0x3b   : > { %v2894_v2 = vshrl.u32 %v437_v0, 7  ;;  %2552 = vset.pattern.permute.xlu0 %v2726_v3  ;;  %2553 = vset.pattern.permute.xlu1 %v2726_v3  ;;  %v517_v33 = vsub.f32 1.0, %v2909_v7  ;;  %v1077_v35 = vld [vmem:[%s3540_s3 + $0x8] sm:$0xff]  ;;  %v1079_v36 = vld [vmem:[%s3540_s3 + $0x18] sm:$0xff]  ;;  %v2973_v52 = vld [vmem:[%s2885_s10 + $0x10] sm:$0x77] }
  0x3c   : > { %s3562_s24 = smov (!%p349_p11, %s2417_s24), 15  ;;  %1160 = vperm.xlu0 %2552, %v1076_v24   ;;  %1170 = vperm.xlu1 %2553, %v1078_v25   ;;  %v1080_v54 = vld [vmem:[%s3541_s4] sm:$0xff]  ;;  %v1081_v55 = vld [vmem:[%s3541_s4 + $0x8] sm:$0xff]  ;;  %vm1045_vm1 = vcmask 1040384   ;;  %vm1054_vm2 = vcmask 1041408   ;;  %vm1063_vm3 = vcmask 1042432  }
  0x3d   : > { %v2897_v4 = vsub.s32 0, %v2894_v2  ;;  %v2900_v5 = vsub.s32 4, %v2894_v2  ;;  %s2418_s16 = sshll.u32 %s3562_s24, 2  ;;  %v2940_v26 = vsub.s32 1, %v2894_v2  ;;  %v2943_v27 = vsub.s32 5, %v2894_v2  ;;  %s2267_s20 = scalar_lea.sflag [#allocation4], %s2879_s13 }
  0x3e   : > { %s2905_s23 = scalar_lea.vmem %s3537_s0, %s2418_s16  ;;  %vm1210_vm7 = vcmask 31744   ;;  %p3554_p12 = scmp.ne.s32.totalorder %s3549_s17, 0 }
  0x3f   : > { %v356_v6 = vld [vmem:[%s2905_s23] sm:$0xff]  ;;  %v2912_v8 = vld [vmem:[%s2905_s23 + $0x8] sm:$0xff]  ;;  %v440_v11 = vrot.slane %v2909_v7, %v2897_v4  ;;  %v444_v12 = vrot.slane %v2909_v7, %v2900_v5  ;;  %v2931_v23 = vld [vmem:[%s2905_s23 + $0x10] sm:$0xff]  ;;  %v448_v34 = vrot.slane %v2946_v28, %v2897_v4  ;;  %v452_v44 = vrot.slane %v2946_v28, %v2900_v5  ;;  %s2727_s24 = smov [#allocation5]  }
  0x40   : > { %v368_v9 = vcombine.high %v356_v6, %v356_v6  ;;  %v377_v10 = vsel %vm376_vm0, %v356_v6, 0.0  ;;  %v2921_v14 = vcombine.high %v2912_v8, %v2912_v8  ;;  %v391_v15 = vsel %vm376_vm0, %v2912_v8, 0.0  ;;  %1165 = vperm.xlu0 %2552, %v1077_v35   ;;  %1175 = vperm.xlu1 %2553, %v1079_v36   ;;  %s2628_s16 = sshll.u32 %s2727_s24, 4  ;;  %s2629_s16 = int_to_ptr.vmem [resolvable:$false] %s2628_s16 }
  0x41   : > { %v378_v13 = vrot.slane %v377_v10, 4  ;;  %v480_v17 = vrot.slane %v440_v11, %v2897_v4  ;;  %v392_v18 = vrot.slane %v391_v15, 4  ;;  %v484_v21 = vrot.slane %v444_v12, %v2897_v4  ;;  %s2630_s26 = scalar_lea.vmem %s2629_s16, 1024 }
  0x42   : > { %v384_v16 = vsel %vm376_vm0, %v368_v9, 0.0  ;;  %v398_v22 = vsel %vm376_vm0, %v2921_v14, 0.0  ;;  %v2961_v40 = vcombine.high %v2931_v23, %v2931_v23  ;;  %v405_v47 = vsel %vm376_vm0, %v2931_v23, 0.0 }
  0x43   : > { %v379_v19 = vadd.f32 %v378_v13, %v377_v10  ;;  %v385_v20 = vrot.slane %v384_v16, 4  ;;  %v393_v29 = vadd.f32 %v392_v18, %v391_v15  ;;  %v399_v30 = vrot.slane %v398_v22, 4  ;;  %v2988_v15 = vld [vmem:[%s2905_s23 + $0x18] sm:$0xff] }
  0x44   : > { %v2957_v37 = vmul.f32 %v480_v17, %v356_v6  ;;  %v2963_v43 = vmul.f32 %v484_v21, %v368_v9  ;;  %v412_v48 = vsel %vm376_vm0, %v2961_v40, 0.0  ;;  %v488_v51 = vrot.slane %v448_v34, %v2897_v4  ;;  %1605 = vperm.xlu0 %2552, %v1080_v54   ;;  %1610 = vperm.xlu1 %2553, %v1081_v55   ;;  %v1083_v17 = vld [vmem:[%s3541_s4 + $0x18] sm:$0xff] }
  0x45   : > { %v380_v31 = vrot.slane %v379_v19, 2  ;;  %v386_v32 = vadd.f32 %v385_v20, %v384_v16  ;;  %v394_v38 = vrot.slane %v393_v29, 2  ;;  %v400_v39 = vadd.f32 %v399_v30, %v398_v22  ;;  %v1082_v16 = vld [vmem:[%s3541_s4 + $0x10] sm:$0xff] }
  0x46   : > { %v406_v53 = vrot.slane %v405_v47, 4  ;;  %v413_v58 = vrot.slane %v412_v48, 4  ;;  %v456_v59 = vrot.slane %v2973_v52, %v2897_v4  ;;  %v492_v62 = vrot.slane %v452_v44, %v2897_v4 }
  0x47   : > { %v381_v41 = vadd.f32 %v380_v31, %v379_v19  ;;  %v387_v42 = vrot.slane %v386_v32, 2  ;;  %v395_v45 = vadd.f32 %v394_v38, %v393_v29  ;;  %v401_v46 = vrot.slane %v400_v39, 2 }
  0x48   : > { %v407_v63 = vadd.f32 %v406_v53, %v405_v47  ;;  %v518_v6 = vsub.f32 1.0, %v2946_v28  ;;  %v414_v9 = vadd.f32 %v413_v58, %v412_v48  ;;  %v460_v13 = vrot.slane %v2973_v52, %v2900_v5  ;;  %1615 = vperm.xlu0 %2552, %v1082_v16   ;;  %1620 = vperm.xlu1 %2553, %v1083_v17   ;;  %v3017_v47 = vld [vmem:[%s2885_s10 + $0x18] sm:$0x77]  ;;  %s3396_s10 = scalar_lea.vmem [#allocation5], %s2415_s21  ;;  %s2466_s21 = sshll.u32 %s2795_s9, 9 }
  0x49   : > { %v382_v49 = vrot.slane %v381_v41, 1  ;;  %v388_v50 = vadd.f32 %v387_v42, %v386_v32  ;;  %v396_v56 = vrot.slane %v395_v45, 1  ;;  %v402_v57 = vadd.f32 %v401_v46, %v400_v39  ;;  %s3467_s25 = scalar_lea.hbm %s3544_s7, %s2466_s21  ;;  %s2285_s15 = sshll.u32 %s3396_s10, 4  ;;  %s2286_s15 = int_to_ptr.vmem [resolvable:$true] %s2285_s15 }
  0x4a   : > { %v408_v12 = vrot.slane %v407_v63, 2  ;;  %v415_v20 = vrot.slane %v414_v9, 2  ;;  %v496_v21 = vrot.slane %v456_v59, %v2897_v4  ;;  %v511_v24 = vmul.f32 %v488_v51, %v2912_v8  ;;  %s2624_s22 = scalar_lea.vmem %s2286_s15, 512  ;;  %p2631_p10 = scmp.lt.s32.totalorder %s2286_s15, %s2629_s16 }
  0x4b   : > { %v383_v60 = vadd.f32 %v382_v49, %v381_v41  ;;  %v389_v61 = vrot.slane %v388_v50, 1  ;;  %v397_v0 = vadd.f32 %v396_v56, %v395_v45  ;;  %v403_v3 = vrot.slane %v402_v57, 1  ;;  %p2625_p6 = scmp.ne.s32.totalorder %s2286_s15, %s2624_s22  ;;  %p2632_p2 = scmp.lt.s32.totalorder %s2630_s26, %s2624_s22 }
  0x4c   : > { %v512_v25 = vmul.f32 %v492_v62, %v2921_v14  ;;  %v409_v29 = vadd.f32 %v408_v12, %v407_v63  ;;  %v416_v31 = vadd.f32 %v415_v20, %v414_v9  ;;  %v3001_v32 = vcombine.high %v2988_v15, %v2988_v15  ;;  %v1085_v14 = vld [vmem:[%s3543_s6] sm:$0xf] }
  0x4d   : > { %v390_v10 = vadd.f32 %v389_v61, %v388_v50  ;;  %v521_v11 = vmul.f32 0.25, %v383_v60  ;;  %v404_v18 = vadd.f32 %v403_v3, %v402_v57  ;;  %v523_v19 = vmul.f32 0.25, %v397_v0  ;;  %1689 = vperm.xlu0 %2552, %v1085_v14   ;;  %p2626_p13 = pnand %p2625_p6, %p3554_p12  ;;  %p2633_p4 = por %p2632_p2, %p2631_p10 }
  0x4e   : > { %v419_v34 = vsel %vm376_vm0, %v2988_v15, 0.0  ;;  %v410_v36 = vrot.slane %v409_v29, 1  ;;  %v500_v38 = vrot.slane %v460_v13, %v2897_v4  ;;  %v417_v41 = vrot.slane %v416_v31, 1 }
  0x4f   : > { %v522_v22 = vmul.f32 0.25, %v390_v10  ;;  %v524_v30 = vmul.f32 0.25, %v404_v18  ;;  %v420_v8 = vrot.slane %v419_v34, 4  ;;  %v3010_v42 = vmul.f32 %v496_v21, %v2931_v23  ;;  %p2627_p7 = pneg %p2626_p13 }
  0x50   : > { %v426_v44 = vsel %vm376_vm0, %v3001_v32, 0.0  ;;  %v411_v46 = vadd.f32 %v410_v36, %v409_v29  ;;  %v418_v51 = vadd.f32 %v417_v41, %v416_v31  ;;  %v519_v53 = vsub.f32 1.0, %v2973_v52 }
  0x51   : > { %v537_v35 = vcombine.low %v521_v11, %v522_v22  ;;  %v538_v39 = vcombine.low %v523_v19, %v524_v30  ;;  %v421_v48 = vadd.f32 %v420_v8, %v419_v34  ;;  %v427_v49 = vrot.slane %v426_v44, 4  ;;  %p2634_p5 = pnand %p2633_p4, %p2627_p7 }
  0x52   : > { %v464_v54 = vrot.slane %v3017_v47, %v2897_v4  ;;  %v525_v56 = vmul.f32 0.25, %v411_v46  ;;  %v526_v59 = vmul.f32 0.25, %v418_v51  ;;  %v3029_v63 = vmul.f32 %v500_v38, %v2961_v40 }
  0x53   : > { %v545_v45 = vmul.f32 %v537_v35, %v517_v33  ;;  %v546_v50 = vmul.f32 %v538_v39, %v518_v6  ;;  %v422_v57 = vrot.slane %v421_v48, 2  ;;  %v428_v60 = vadd.f32 %v427_v49, %v426_v44 }
  0x54   : > { %v539_v9 = vcombine.low %v525_v56, %v526_v59  ;;  %v468_v10 = vrot.slane %v3017_v47, %v2900_v5  ;;  %v3040_v16 = vrot.slane %v464_v54, %v2897_v4 }
  0x55   : > { %v556_v23 = vrot.slane %v545_v45, %v2897_v4  ;;  %v560_v55 = vrot.slane %v545_v45, %v2900_v5  ;;  %v564_v33 = vrot.slane %v546_v50, %v2897_v4  ;;  %v568_v58 = vrot.slane %v546_v50, %v2900_v5 }
  0x56   : > { %v3031_v0 = vadd.f32 %v422_v57, %v421_v48  ;;  %v429_v13 = vrot.slane %v428_v60, 2  ;;  %v3042_v18 = vmul.f32 %v539_v9, %v519_v53 }
  0x57   : > { %v596_v61 = vrot.slane %v556_v23, %v2897_v4  ;;  %v600_v62 = vrot.slane %v560_v55, %v2897_v4  ;;  %v604_v3 = vrot.slane %v564_v33, %v2897_v4  ;;  %v608_v6 = vrot.slane %v568_v58, %v2897_v4 }
  0x58   : > { %v424_v19 = vrot.slane %v3031_v0, 1  ;;  %v430_v45 = vadd.f32 %v429_v13, %v428_v60 }
  0x59   : > { %v625_v11 = vadd.f32 %v596_v61, %v2957_v37  ;;  %v626_v12 = vadd.f32 %v600_v62, %v2963_v43  ;;  %v627_v40 = vadd.f32 %v604_v3, %v511_v24  ;;  %v628_v17 = vadd.f32 %v608_v6, %v512_v25 }
  0x5b   : > { %v633_v20 = vsel %vm376_vm0, %v625_v11, 0.0  ;;  %v640_v21 = vsel %vm376_vm0, %v626_v12, 0.0  ;;  %v721_v22 = vrot.slane %v625_v11, 1  ;;  %v722_v29 = vrot.slane %v626_v12, 1 }
  0x5c   : > { %v634_v30 = vrot.slane %v633_v20, 4  ;;  %v641_v37 = vrot.slane %v640_v21, 4  ;;  %v745_v31 = vrot.slane %v625_v11, 2  ;;  %v746_v43 = vrot.slane %v626_v12, 2 }
  0x5d   : > { %v737_v34 = vadd.f32 %v721_v22, %v625_v11  ;;  %v738_v35 = vadd.f32 %v722_v29, %v626_v12  ;;  %v769_v36 = vcombine.low %v625_v11, %v626_v12  ;;  %v647_v24 = vsel %vm376_vm0, %v627_v40, 0.0 }
  0x5e   : > { %v635_v25 = vadd.f32 %v634_v30, %v633_v20  ;;  %v642_v38 = vadd.f32 %v641_v37, %v640_v21  ;;  %v648_v8 = vrot.slane %v647_v24, 4  ;;  %v654_v14 = vsel %vm376_vm0, %v628_v17, 0.0 }
  0x5f   : > { %v761_v39 = vadd.f32 %v745_v31, %v737_v34  ;;  %v762_v41 = vadd.f32 %v746_v43, %v738_v35  ;;  %v801_v44 = vcombine.low %v737_v34, %v738_v35  ;;  %v655_v50 = vrot.slane %v654_v14, 4 }
  0x60   : > { %v636_v46 = vrot.slane %v635_v25, 2  ;;  %v643_v48 = vrot.slane %v642_v38, 2  ;;  %v649_v49 = vadd.f32 %v648_v8, %v647_v24  ;;  %v773_v51 = vrot.slane %v769_v36, 7 }
  0x61   : > { %v805_v53 = vrot.slane %v801_v44, 7  ;;  %v723_v54 = vrot.slane %v627_v40, 1  ;;  %v724_v23 = vrot.slane %v628_v17, 1  ;;  %v656_v33 = vadd.f32 %v655_v50, %v654_v14 }
  0x62   : > { %v637_v55 = vadd.f32 %v636_v46, %v635_v25  ;;  %v644_v56 = vadd.f32 %v643_v48, %v642_v38  ;;  %v650_v57 = vrot.slane %v649_v49, 2  ;;  %v833_v58 = vcombine.low %v761_v39, %v762_v41 }
  0x63   : > { %v739_v59 = vadd.f32 %v723_v54, %v627_v40  ;;  %v740_v61 = vadd.f32 %v724_v23, %v628_v17  ;;  %v747_v62 = vrot.slane %v627_v40, 2  ;;  %v657_v60 = vrot.slane %v656_v33, 2 }
  0x64   : > { %v638_v3 = vrot.slane %v637_v55, 1  ;;  %v645_v6 = vrot.slane %v644_v56, 1  ;;  %v651_v9 = vadd.f32 %v650_v57, %v649_v49  ;;  %v748_v11 = vrot.slane %v628_v17, 2 }
  0x65   : > { %v763_v12 = vadd.f32 %v747_v62, %v739_v59  ;;  %v770_v13 = vcombine.low %v627_v40, %v628_v17  ;;  %v802_v20 = vcombine.low %v739_v59, %v740_v61  ;;  %v658_v30 = vadd.f32 %v657_v60, %v656_v33 }
  0x66   : > { %v639_v21 = vadd.f32 %v638_v3, %v637_v55  ;;  %v646_v22 = vadd.f32 %v645_v6, %v644_v56  ;;  %v652_v29 = vrot.slane %v651_v9, 1  ;;  %v837_v37 = vrot.slane %v833_v58, 7 }
  0x67   : > { %v764_v31 = vadd.f32 %v748_v11, %v740_v61  ;;  %v774_v43 = vrot.slane %v770_v13, 7  ;;  %v572_v34 = vrot.slane %v3042_v18, %v2897_v4  ;;  %v659_v24 = vrot.slane %v658_v30, 1 }
  0x68   : > { %v697_v35 = vcombine.low %v639_v21, %v646_v22  ;;  %v653_v36 = vadd.f32 %v652_v29, %v651_v9  ;;  %v576_v25 = vrot.slane %v3042_v18, %v2900_v5  ;;  %v425_v17 = vadd.f32 %v424_v19, %v3031_v0 }
  0x69   : > { %v834_v38 = vcombine.low %v763_v12, %v764_v31  ;;  %v612_v40 = vrot.slane %v572_v34, %v2897_v4  ;;  %v431_v8 = vrot.slane %v430_v45, 1  ;;  %v660_v39 = vadd.f32 %v659_v24, %v658_v30 }
  0x6a   : > { %v701_v14 = vrot.slane %v697_v35, 7  ;;  %v806_v41 = vrot.slane %v802_v20, 7  ;;  %v616_v44 = vrot.slane %v576_v25, %v2897_v4  ;;  %v520_v18 = vsub.f32 1.0, %v3017_v47 }
  0x6b   : > { %v838_v46 = vrot.slane %v834_v38, 7  ;;  %v3057_v48 = vadd.f32 %v612_v40, %v3010_v42  ;;  %v432_v49 = vadd.f32 %v431_v8, %v430_v45  ;;  %v698_v54 = vcombine.low %v653_v36, %v660_v39 }
  0x6c   : > { %v709_v50 = vmul.f32 %v701_v14, %v2909_v7  ;;  %v3062_v0 = vadd.f32 %v616_v44, %v3029_v63  ;;  %v3064_v19 = vmul.f32 0.25, %v425_v17 }
  0x6d   : > { %v661_v23 = vsel %vm376_vm0, %v3057_v48, 0.0  ;;  %v725_v55 = vrot.slane %v3057_v48, 1  ;;  %v749_v56 = vrot.slane %v3057_v48, 2  ;;  %v3070_v42 = vmul.f32 0.25, %v432_v49 }
  0x6e   : > { %vm781_vm4 = vcmp.ge.f32.partialorder %v709_v50, %v773_v51  ;;  %vm813_vm5 = vcmp.ge.f32.partialorder %v709_v50, %v805_v53  ;;  %vm845_vm6 = vcmp.ge.f32.partialorder %v709_v50, %v837_v37  ;;  %v702_v45 = vrot.slane %v698_v54, 7 }
  0x6f   : > { %v2419_v57 = vsel %vm781_vm4, 1.0, %v2725_v1  ;;  %v2423_v63 = vsel %vm813_vm5, 1.0, %v2725_v1  ;;  %v2427_v33 = vsel %vm845_vm6, 1.0, %v2725_v1  ;;  %v662_v58 = vrot.slane %v661_v23, 4 }
  0x70   : > { %v857_v59 = vsub.f32 1.0, %v2419_v57  ;;  %v861_v61 = vsub.f32 %v2419_v57, %v2423_v63  ;;  %v865_v62 = vsub.f32 %v2423_v63, %v2427_v33  ;;  %v1012_v3 = vrot.slane %v2427_v33, %v2943_v27 }
  0x71   : > { %v710_v6 = vmul.f32 %v702_v45, %v2946_v28  ;;  %v1008_v51 = vrot.slane %v2427_v33, %v2940_v26  ;;  %v663_v53 = vadd.f32 %v662_v58, %v661_v23  ;;  %v668_v9 = vsel %vm376_vm0, %v3062_v0, 0.0 }
  0x72   : > { %v880_v60 = vrot.slane %v857_v59, %v2943_v27  ;;  %v924_v11 = vrot.slane %v861_v61, %v2943_v27  ;;  %v968_v12 = vrot.slane %v865_v62, %v2943_v27  ;;  %v876_v13 = vrot.slane %v857_v59, %v2940_v26 }
  0x73   : > { %vm782_vm8 = vcmp.ge.f32.partialorder %v710_v6, %v774_v43  ;;  %vm814_vm9 = vcmp.ge.f32.partialorder %v710_v6, %v806_v41  ;;  %vm846_vm10 = vcmp.ge.f32.partialorder %v710_v6, %v838_v46  ;;  %v920_v20 = vrot.slane %v861_v61, %v2940_v26  ;;  %v3106_v46 = vld [vmem:[%s3539_s2] sm:$0xff] }
  0x74   : > { %v1047_v21 = vsel %vm1045_vm1, %v880_v60, %v924_v11  ;;  %v2420_v22 = vsel %vm782_vm8, 1.0, %v2725_v1  ;;  %v2424_v29 = vsel %vm814_vm9, 1.0, %v2725_v1  ;;  %v2428_v30 = vsel %vm846_vm10, 1.0, %v2725_v1 }
  0x75   : > { %v1056_v37 = vsel %vm1054_vm2, %v1047_v21, %v968_v12  ;;  %v858_v31 = vsub.f32 1.0, %v2420_v22  ;;  %v862_v34 = vsub.f32 %v2420_v22, %v2424_v29  ;;  %v866_v35 = vsub.f32 %v2424_v29, %v2428_v30 }
  0x76   : > { %v1065_v36 = vsel %vm1063_vm3, %v1056_v37, %v1012_v3  ;;  %v1020_v43 = vrot.slane %v2428_v30, %v2943_v27  ;;  %v964_v24 = vrot.slane %v865_v62, %v2940_v26  ;;  %v1046_v25 = vsel %vm1045_vm1, %v876_v13, %v920_v20 }
  0x77   : > { %2431 = vmatprep.subr.msk.mxu0 %vm376_vm0, %v1065_v36  ;;  %v888_v38 = vrot.slane %v858_v31, %v2943_v27  ;;  %v932_v40 = vrot.slane %v862_v34, %v2943_v27  ;;  %v976_v17 = vrot.slane %v866_v35, %v2943_v27  ;;  %v884_v8 = vrot.slane %v858_v31, %v2940_v26 }
  0x78   : > { %v1055_v14 = vsel %vm1054_vm2, %v1046_v25, %v964_v24  ;;  %v928_v39 = vrot.slane %v862_v34, %v2940_v26  ;;  %v972_v41 = vrot.slane %v866_v35, %v2940_v26  ;;  %v1016_v44 = vrot.slane %v2428_v30, %v2940_v26 }
  0x79   : > { %v1049_v49 = vsel %vm1045_vm1, %v888_v38, %v932_v40  ;;  %v1064_v50 = vsel %vm1063_vm3, %v1055_v14, %v1008_v51  ;;  %v664_v54 = vrot.slane %v663_v53, 2  ;;  %v669_v23 = vrot.slane %v668_v9, 4 }
  0x7a   : > { %v1058_v45 = vsel %vm1054_vm2, %v1049_v49, %v976_v17  ;;  %2432 = vmatpush1.msk.msra.mxu0 %vm376_vm0, %v1064_v50  ;;  %v1048_v57 = vsel %vm1045_vm1, %v884_v8, %v928_v39  ;;  %v726_v63 = vrot.slane %v3062_v0, 1  ;;  %v741_v33 = vadd.f32 %v725_v55, %v3057_v48  ;;  %v3127_v55 = vld [vmem:[%s3539_s2 + $0x8] sm:$0xff] }
  0x7b   : > { %v1067_v58 = vsel %vm1063_vm3, %v1058_v45, %v1020_v43  ;;  %v1057_v59 = vsel %vm1054_vm2, %v1048_v57, %v972_v41  ;;  %2433 = vmatmul.mubr.msk.f32.vlgmr.msra.gmra.mrb[0].mxu0 %vm1210_vm7, %v3106_v46  ;;  %v665_v61 = vadd.f32 %v664_v54, %v663_v53  ;;  %v670_v62 = vadd.f32 %v669_v23, %v668_v9 }
  0x7c   : > { %2437 = vmatprep.subr.msk.mxu1 %vm376_vm0, %v1067_v58  ;;  %v1066_v3 = vsel %vm1063_vm3, %v1057_v59, %v1016_v44  ;;  %v742_v6 = vadd.f32 %v726_v63, %v3062_v0  ;;  %v750_v51 = vrot.slane %v3062_v0, 2  ;;  %1317 = vmatprep.mubr.f32.mxu0 %v2725_v1  ;;  %v508_v53 = vrot.slane %v468_v10, %v2897_v4 }
  0x7d   : > { %2438 = vmatpush1.msk.msra.mxu1 %vm376_vm0, %v1066_v3  ;;  %v666_v9 = vrot.slane %v665_v61, 1  ;;  %v671_v60 = vrot.slane %v670_v62, 2  ;;  %v540_v11 = vcombine.low %v3064_v19, %v3070_v42  ;;  %v765_v12 = vadd.f32 %v749_v56, %v741_v33  ;;  %v3152_v56 = vld [vmem:[%s3539_s2 + $0x10] sm:$0xff] }
  0x7e   : > { %2439 = vmatmul.mubr.msk.f32.vlgmr.msra.gmra.mrb[0].mxu1 %vm1210_vm7, %v3106_v46  ;;  %v766_v13 = vadd.f32 %v750_v51, %v742_v6  ;;  %v515_v21 = vmul.f32 %v3040_v16, %v2988_v15  ;;  %v516_v19 = vmul.f32 %v508_v53, %v3001_v32  ;;  %v803_v37 = vcombine.low %v741_v33, %v742_v6 }
  0x7f   : > { %v672_v20 = vadd.f32 %v671_v60, %v670_v62  ;;  %1406 = vmatprep.mubr.f32.mxu1 %v2725_v1  ;;  %2434 = vmatmul.mubr.msk.f32.gmra.mrb[2].mxu0 %vm1210_vm7, %v3127_v55  ;;  %v548_v10 = vmul.f32 %v540_v11, %v520_v18  ;;  %v667_v42 = vadd.f32 %v666_v9, %v665_v61 }
  0x80   : > { %1323 = vmatprep.mubr.f32.mxu0 %v2725_v1  ;;  %v771_v18 = vcombine.low %v3057_v48, %v3062_v0  ;;  %v835_v15 = vcombine.low %v765_v12, %v766_v13  ;;  %v807_v36 = vrot.slane %v803_v37, 7 }
  0x81   : > { %v673_v22 = vrot.slane %v672_v20, 1  ;;  %v580_v29 = vrot.slane %v548_v10, %v2897_v4  ;;  %v584_v30 = vrot.slane %v548_v10, %v2900_v5  ;;  %v3169_v5 = vld [vmem:[%s3539_s2 + $0x18] sm:$0xff] }
  0x82   : > { %2440 = vmatmul.mubr.msk.f32.gmra.mrb[2].mxu1 %vm1210_vm7, %v3127_v55  ;;  %v775_v35 = vrot.slane %v771_v18, 7 }
  0x83   : > { %v674_v32 = vadd.f32 %v673_v22, %v672_v20  ;;  %v620_v16 = vrot.slane %v580_v29, %v2897_v4  ;;  %v624_v31 = vrot.slane %v584_v30, %v2897_v4  ;;  %1412 = vmatprep.mubr.f32.mxu1 %v2725_v1  ;;  %2435 = vmatmul.mubr.msk.f32.gmra.mrb[4].mxu0 %vm1210_vm7, %v3152_v56  ;;  %v839_v4 = vrot.slane %v835_v15, 7 }
  0x84   : > { %1329 = vmatprep.mubr.f32.mxu0 %v2725_v1 }
  0x85   : > { %v699_v48 = vcombine.low %v667_v42, %v674_v32  ;;  %v3171_v0 = vadd.f32 %v620_v16, %v515_v21  ;;  %v3173_v34 = vadd.f32 %v624_v31, %v516_v19 }
  0x86   : > { %2441 = vmatmul.mubr.msk.f32.gmra.mrb[4].mxu1 %vm1210_vm7, %v3152_v56 }
  0x87   : > { %v703_v43 = vrot.slane %v699_v48, 7  ;;  %v675_v24 = vsel %vm376_vm0, %v3171_v0, 0.0  ;;  %v682_v25 = vsel %vm376_vm0, %v3173_v34, 0.0  ;;  %v727_v38 = vrot.slane %v3171_v0, 1  ;;  %1418 = vmatprep.mubr.f32.mxu1 %v2725_v1  ;;  %2436 = vmatmul.mubr.msk.f32.gmra.mrb[6].mxu0 %vm1210_vm7, %v3169_v5 }
  0x88   : > { %v676_v40 = vrot.slane %v675_v24, 4  ;;  %v683_v17 = vrot.slane %v682_v25, 4  ;;  %v728_v8 = vrot.slane %v3173_v34, 1  ;;  %v751_v14 = vrot.slane %v3171_v0, 2  ;;  %1489 = vmatprep.mubr.f32.mxu0 %v2725_v1 }
  0x89   : > { %v711_v39 = vmul.f32 %v703_v43, %v2973_v52  ;;  %v743_v41 = vadd.f32 %v727_v38, %v3171_v0  ;;  %v752_v54 = vrot.slane %v3173_v34, 2  ;;  %v772_v15 = vcombine.low %v3171_v0, %v3173_v34 }
  0x8a   : > { %v677_v44 = vadd.f32 %v676_v40, %v675_v24  ;;  %v684_v49 = vadd.f32 %v683_v17, %v682_v25  ;;  %v744_v50 = vadd.f32 %v728_v8, %v3173_v34  ;;  %2442 = vmatmul.mubr.msk.f32.gmra.mrb[6].mxu1 %vm1210_vm7, %v3169_v5 }
  0x8b   : > { %vm783_vm11 = vcmp.ge.f32.partialorder %v711_v39, %v775_v35  ;;  %vm815_vm12 = vcmp.ge.f32.partialorder %v711_v39, %v807_v36  ;;  %vm847_vm13 = vcmp.ge.f32.partialorder %v711_v39, %v839_v4  ;;  %v767_v23 = vadd.f32 %v751_v14, %v743_v41  ;;  %1578 = vmatprep.mubr.f32.mxu1 %v2725_v1 }
  0x8c   : > { %v2421_v45 = vsel %vm783_vm11, 1.0, %v2725_v1  ;;  %v2425_v57 = vsel %vm815_vm12, 1.0, %v2725_v1  ;;  %v2429_v63 = vsel %vm847_vm13, 1.0, %v2725_v1  ;;  %v678_v33 = vrot.slane %v677_v44, 2 }
  0x8d   : > { %v859_v58 = vsub.f32 1.0, %v2421_v45  ;;  %v863_v59 = vsub.f32 %v2421_v45, %v2425_v57  ;;  %v867_v61 = vsub.f32 %v2425_v57, %v2429_v63  ;;  %v1028_v62 = vrot.slane %v2429_v63, %v2943_v27 }
  0x8e   : > { %v1024_v3 = vrot.slane %v2429_v63, %v2940_v26  ;;  %v679_v6 = vadd.f32 %v678_v33, %v677_v44  ;;  %v685_v51 = vrot.slane %v684_v49, 2  ;;  %v768_v53 = vadd.f32 %v752_v54, %v744_v50 }
  0x8f   : > { %v896_v9 = vrot.slane %v859_v58, %v2943_v27  ;;  %v940_v60 = vrot.slane %v863_v59, %v2943_v27  ;;  %v984_v11 = vrot.slane %v867_v61, %v2943_v27  ;;  %v892_v12 = vrot.slane %v859_v58, %v2940_v26 }
  0x90   : > { %v936_v13 = vrot.slane %v863_v59, %v2940_v26  ;;  %v980_v20 = vrot.slane %v867_v61, %v2940_v26  ;;  %v680_v10 = vrot.slane %v679_v6, 1  ;;  %v686_v21 = vadd.f32 %v685_v51, %v684_v49 }
  0x91   : > { %v1051_v19 = vsel %vm1045_vm1, %v896_v9, %v940_v60  ;;  %v804_v31 = vcombine.low %v743_v41, %v744_v50  ;;  %v836_v48 = vcombine.low %v767_v23, %v768_v53  ;;  %v776_v4 = vrot.slane %v772_v15, 7 }
  0x92   : > { %v1060_v42 = vsel %vm1054_vm2, %v1051_v19, %v984_v11  ;;  %v1050_v22 = vsel %vm1045_vm1, %v892_v12, %v936_v13  ;;  %v681_v29 = vadd.f32 %v680_v10, %v679_v6  ;;  %v687_v30 = vrot.slane %v686_v21, 1 }
  0x93   : > { %v1069_v18 = vsel %vm1063_vm3, %v1060_v42, %v1028_v62  ;;  %v1059_v37 = vsel %vm1054_vm2, %v1050_v22, %v980_v20  ;;  %v808_v43 = vrot.slane %v804_v31, 7  ;;  %v840_v24 = vrot.slane %v836_v48, 7 }
  0x94   : > { %2443 = vmatprep.subr.msk.mxu0 %vm376_vm0, %v1069_v18  ;;  %v1068_v32 = vsel %vm1063_vm3, %v1059_v37, %v1024_v3  ;;  %v688_v16 = vadd.f32 %v687_v30, %v686_v21 }
  0x95   : > { %2444 = vmatpush1.msk.msra.mxu0 %vm376_vm0, %v1068_v32 }
  0x96   : > { %v700_v35 = vcombine.low %v681_v29, %v688_v16  ;;  %2445 = vmatmul.mubr.msk.f32.vlgmr.msra.gmra.mrb[8].mxu0 %vm1210_vm7, %v3106_v46 }
  0x97   : > { %1495 = vmatprep.mubr.f32.mxu0 %v2725_v1 }
  0x98   : > { %v704_v36 = vrot.slane %v700_v35, 7 }
  0x9a   : > { %v712_v0 = vmul.f32 %v704_v36, %v3017_v47  ;;  %2446 = vmatmul.mubr.msk.f32.gmra.mrb[10].mxu0 %vm1210_vm7, %v3127_v55 }
  0x9b   : > { %1501 = vmatprep.mubr.f32.mxu0 %v2725_v1 }
  0x9c   : > { %vm784_vm14 = vcmp.ge.f32.partialorder %v712_v0, %v776_v4  ;;  %vm816_vm15 = vcmp.ge.f32.partialorder %v712_v0, %v808_v43  ;;  %vm848_vm4 = vcmp.ge.f32.partialorder %v712_v0, %v840_v24 }
  0x9d   : > { %v2422_v34 = vsel %vm784_vm14, 1.0, %v2725_v1  ;;  %v2426_v25 = vsel %vm816_vm15, 1.0, %v2725_v1  ;;  %v2430_v38 = vsel %vm848_vm4, 1.0, %v2725_v1 }
  0x9e   : > { %v860_v40 = vsub.f32 1.0, %v2422_v34  ;;  %v864_v17 = vsub.f32 %v2422_v34, %v2426_v25  ;;  %v868_v8 = vsub.f32 %v2426_v25, %v2430_v38  ;;  %2447 = vmatmul.mubr.msk.f32.gmra.mrb[12].mxu0 %vm1210_vm7, %v3152_v56  ;;  %v1036_v14 = vrot.slane %v2430_v38, %v2943_v27 }
  0x9f   : > { %1507 = vmatprep.mubr.f32.mxu0 %v2725_v1  ;;  %v1032_v23 = vrot.slane %v2430_v38, %v2940_v26 }
  0xa0   : > { %v904_v39 = vrot.slane %v860_v40, %v2943_v27  ;;  %v948_v41 = vrot.slane %v864_v17, %v2943_v27  ;;  %v992_v44 = vrot.slane %v868_v8, %v2943_v27  ;;  %v900_v49 = vrot.slane %v860_v40, %v2940_v26 }
  0xa1   : > { %v944_v50 = vrot.slane %v864_v17, %v2940_v26  ;;  %v988_v54 = vrot.slane %v868_v8, %v2940_v26  ;;  %v3261_v26 = vsub.s32 2, %v2894_v2 }
  0xa2   : > { %v1053_v45 = vsel %vm1045_vm1, %v904_v39, %v948_v41  ;;  %2448 = vmatmul.mubr.msk.f32.gmra.mrb[14].mxu0 %vm1210_vm7, %v3169_v5 }
  0xa3   : > { %v1062_v57 = vsel %vm1054_vm2, %v1053_v45, %v992_v44  ;;  %v1052_v63 = vsel %vm1045_vm1, %v900_v49, %v944_v50  ;;  %1760 = vmatprep.mubr.f32.mxu0 %v2725_v1  ;;  %vm1692_vm1 = vcmask 261120  }
  0xa4   : > { %v1071_v27 = vsel %vm1063_vm3, %v1062_v57, %v1036_v14  ;;  %v1061_v33 = vsel %vm1054_vm2, %v1052_v63, %v988_v54 }
  0xa5   : > { %2449 = vmatprep.subr.msk.mxu1 %vm376_vm0, %v1071_v27  ;;  %v1070_v58 = vsel %vm1063_vm3, %v1061_v33, %v1032_v23 }
  0xa6   : > { %2450 = vmatpush1.msk.msra.mxu1 %vm376_vm0, %v1070_v58 }
  0xa7   : > { %2451 = vmatmul.mubr.msk.f32.vlgmr.msra.gmra.mrb[8].mxu1 %vm1210_vm7, %v3106_v46  ;;  %v3264_v46 = vsub.s32 6, %v2894_v2 }
  0xa8   : > { %1584 = vmatprep.mubr.f32.mxu1 %v2725_v1 }
  0xa9   : > { %v1101_v3 = vrot.slane %v2946_v28, %v3264_v46 }
  0xab   : > { %2452 = vmatmul.mubr.msk.f32.gmra.mrb[10].mxu1 %vm1210_vm7, %v3127_v55  ;;  %v1089_v55 = vrot.slane %v2909_v7, %v3261_v26  ;;  %v1141_v9 = vrot.slane %v1101_v3, %v3261_v26 }
  0xac   : > { %1590 = vmatprep.mubr.f32.mxu1 %v2725_v1 }
  0xad   : > { %v1129_v62 = vrot.slane %v1089_v55, %v3261_v26 }
  0xaf   : > { %2453 = vmatmul.mubr.msk.f32.gmra.mrb[12].mxu1 %vm1210_vm7, %v3152_v56  ;;  %v1093_v56 = vrot.slane %v2909_v7, %v3264_v46 }
  0xb0   : > { %1596 = vmatprep.mubr.f32.mxu1 %v2725_v1 }
  0xb1   : > { %v1133_v2 = vrot.slane %v1093_v56, %v3261_v26 }
  0xb3   : > { %2454 = vmatmul.mubr.msk.f32.gmra.mrb[14].mxu1 %vm1210_vm7, %v3169_v5  ;;  %v1097_v5 = vrot.slane %v2946_v28, %v3261_v26 }
  0xb4   : > { %1831 = vmatprep.mubr.f32.mxu1 %v2725_v1 }
  0xb5   : > { %v1137_v51 = vrot.slane %v1097_v5, %v3261_v26 }
  0xbb   : > { %v3266_v59 = vpop.permute.xlu0 %1160  ;;  %v3272_v61 = vpop.permute.xlu1 %1170 }
  0xbc   : > { %v1178_v7 = vmul.f32 %v3266_v59, %v1129_v62  ;;  %v1179_v60 = vmul.f32 %v3266_v59, %v1133_v2  ;;  %v1180_v12 = vmul.f32 %v3266_v59, %v1137_v51  ;;  %v1181_v10 = vmul.f32 %v3266_v59, %v1141_v9 }
  0xbd   : > { %v1194_v4 = vmul.f32 %v3272_v61, %v1129_v62  ;;  %v1196_v0 = vmul.f32 %v3272_v61, %v1137_v51  ;;  %v1195_v34 = vmul.f32 %v3272_v61, %v1133_v2  ;;  %v1197_v17 = vmul.f32 %v3272_v61, %v1141_v9 }
  0xbf   : > { %v3280_v6 = vpop.permute.xlu0 %1165  ;;  %v3283_v53 = vpop.permute.xlu1 %1175 }
  0xc0   : > { %v1186_v21 = vmul.f32 %v3280_v6, %v1129_v62  ;;  %v1187_v42 = vmul.f32 %v3280_v6, %v1133_v2  ;;  %v1188_v32 = vmul.f32 %v3280_v6, %v1137_v51  ;;  %v1189_v16 = vmul.f32 %v3280_v6, %v1141_v9 }
  0xc1   : > { %v1202_v8 = vmul.f32 %v3283_v53, %v1129_v62  ;;  %v1203_v50 = vmul.f32 %v3283_v53, %v1133_v2 }
  0xc3   : > { %v3289_v13 = vpop.permute.xlu0 %1605  ;;  %v3294_v22 = vpop.permute.xlu1 %1610 }
  0xc7   : > { %v3311_v56 = vpop.permute.xlu0 %1615 }
 0x14e   : > { %v1313_v11 = vpop.f32.mrb[0].mxu0 }
 0x14f   : > { %v1314_v28 = vadd.f32 %v1313_v11, %v1178_v7  ;;  %v1315_v20 = vpop.f32.mrb[1].mxu0 }
 0x150   : > { %v1316_v19 = vadd.f32 %v1315_v20, %v1179_v60  ;;  %v1204_v60 = vmul.f32 %v3283_v53, %v1137_v51  ;;  %v1205_v20 = vmul.f32 %v3283_v53, %v1141_v9 }
 0x151   : > { %v1402_v29 = vpop.f32.mrb[0].mxu1  ;;  %v1623_v30 = vadd.f32 %v3289_v13, %v1314_v28 }
 0x152   : > { %v1403_v18 = vadd.f32 %v1402_v29, %v1180_v12  ;;  %v1404_v37 = vpop.f32.mrb[1].mxu1  ;;  %v1319_v15 = vpop.f32.mrb[2].mxu0  ;;  %v1624_v31 = vadd.f32 %v3289_v13, %v1316_v19 }
 0x153   : > { %v1405_v48 = vadd.f32 %v1404_v37, %v1181_v10  ;;  %v1320_v35 = vadd.f32 %v1319_v15, %v1186_v21  ;;  %v1321_v36 = vpop.f32.mrb[3].mxu0  ;;  %v1655_v14 = vmax.f32 %v1623_v30, 0.0 }
 0x154   : > { %v1625_v43 = vadd.f32 %v3289_v13, %v1403_v18  ;;  %v1322_v24 = vadd.f32 %v1321_v36, %v1187_v42  ;;  %v1656_v54 = vmax.f32 %v1624_v31, 0.0  ;;  %v3317_v18 = vpop.permute.xlu1 %1620 }
 0x155   : > { %v1626_v25 = vadd.f32 %v3289_v13, %v1405_v48  ;;  %v1631_v38 = vadd.f32 %v3294_v22, %v1320_v35  ;;  %v1408_v40 = vpop.f32.mrb[2].mxu1 }
 0x156   : > { %v1409_v39 = vadd.f32 %v1408_v40, %v1188_v32  ;;  %v1632_v41 = vadd.f32 %v3294_v22, %v1322_v24  ;;  %v1410_v44 = vpop.f32.mrb[3].mxu1  ;;  %v1325_v49 = vpop.f32.mrb[4].mxu0  ;;  %v1657_v27 = vmax.f32 %v1625_v43, 0.0  ;;  %v1105_v40 = vrot.slane %v2973_v52, %v3261_v26 }
 0x157   : > { %v1663_v23 = vmax.f32 %v1631_v38, 0.0  ;;  %v1411_v45 = vadd.f32 %v1410_v44, %v1189_v16  ;;  %v1326_v57 = vadd.f32 %v1325_v49, %v1194_v4  ;;  %v1327_v63 = vpop.f32.mrb[5].mxu0  ;;  %v1658_v5 = vmax.f32 %v1626_v25, 0.0 }
 0x158   : > { %v1633_v33 = vadd.f32 %v3294_v22, %v1409_v39  ;;  %v1664_v58 = vmax.f32 %v1632_v41, 0.0  ;;  %v1328_v55 = vadd.f32 %v1327_v63, %v1195_v34  ;;  %v3335_v63 = vld [vmem:[%s3542_s5] sm:$0xf] }
 0x159   : > { %v2469_v62 = vpack.c.bf16 %v1663_v23, %v1655_v14  ;;  %v1634_v3 = vadd.f32 %v3294_v22, %v1411_v45  ;;  %v1414_v7 = vpop.f32.mrb[4].mxu1  ;;  %v1639_v19 = vadd.f32 %v3311_v56, %v1326_v57  ;;  %v1109_v14 = vrot.slane %v2973_v52, %v3264_v46 }
 0x15a   : > { %v1665_v2 = vmax.f32 %v1633_v33, 0.0  ;;  %v1415_v11 = vadd.f32 %v1414_v7, %v1196_v0  ;;  %v1416_v12 = vpop.f32.mrb[5].mxu1  ;;  %v1331_v28 = vpop.f32.mrb[6].mxu0  ;;  %v2467_v10 = vpack.c.bf16 %v1664_v58, %v1656_v54  ;;  %v1640_v15 = vadd.f32 %v3311_v56, %v1328_v55 }
 0x15b   : > { %v1666_v21 = vmax.f32 %v1634_v3, 0.0  ;;  %v1417_v42 = vadd.f32 %v1416_v12, %v1197_v17  ;;  %v1332_v29 = vadd.f32 %v1331_v28, %v1202_v8  ;;  %v1333_v30 = vpop.f32.mrb[7].mxu0  ;;  %v1671_v4 = vmax.f32 %v1639_v19, 0.0 }
 0x15c   : > { %v2477_v37 = vpack.c.bf16 %v1665_v2, %v1657_v27  ;;  %v1334_v32 = vadd.f32 %v1333_v30, %v1203_v50  ;;  %2468 = vmatprep.subr.bf16.mxu0 %v2467_v10  ;;  %v1641_v9 = vadd.f32 %v3311_v56, %v1415_v11  ;;  %v1672_v34 = vmax.f32 %v1640_v15, 0.0 }
 0x15d   : > { %v1647_v51 = vadd.f32 %v3317_v18, %v1332_v29  ;;  %v1420_v16 = vpop.f32.mrb[6].mxu1  ;;  %v2475_v31 = vpack.c.bf16 %v1666_v21, %v1658_v5  ;;  %2470 = vmatpush1.bf16.msra.mxu0 %v2469_v62  ;;  %v1642_v43 = vadd.f32 %v3311_v56, %v1417_v42  ;;  %v1145_v23 = vrot.slane %v1105_v40, %v3261_v26 }
 0x15e   : > { %v1421_v48 = vadd.f32 %v1420_v16, %v1204_v60  ;;  %v1648_v35 = vadd.f32 %v3317_v18, %v1334_v32  ;;  %v1422_v36 = vpop.f32.mrb[7].mxu1  ;;  %v1673_v39 = vmax.f32 %v1641_v9, 0.0  ;;  %v1149_v45 = vrot.slane %v1109_v14, %v3261_v26 }
 0x15f   : > { %v1679_v24 = vmax.f32 %v1647_v51, 0.0  ;;  %v1423_v0 = vadd.f32 %v1422_v36, %v1205_v20  ;;  %2476 = vmatprep.subr.bf16.mxu1 %v2475_v31  ;;  %v1674_v49 = vmax.f32 %v1642_v43, 0.0  ;;  %v1182_v52 = vmul.f32 %v3266_v59, %v1145_v23 }
 0x160   : > { %v1649_v25 = vadd.f32 %v3317_v18, %v1421_v48  ;;  %v1680_v38 = vmax.f32 %v1648_v35, 0.0  ;;  %2478 = vmatpush1.bf16.msra.mxu1 %v2477_v37  ;;  %v1183_v33 = vmul.f32 %v3266_v59, %v1149_v45  ;;  %v1190_v62 = vmul.f32 %v3280_v6, %v1145_v23 }
 0x161   : > { %v2473_v17 = vpack.c.bf16 %v1679_v24, %v1671_v4  ;;  %v1650_v8 = vadd.f32 %v3317_v18, %v1423_v0  ;;  %v1191_v7 = vmul.f32 %v3280_v6, %v1149_v45  ;;  %v1198_v10 = vmul.f32 %v3272_v61, %v1145_v23 }
 0x162   : > { %v1681_v41 = vmax.f32 %v1649_v25, 0.0  ;;  %v2471_v44 = vpack.c.bf16 %v1680_v38, %v1672_v34  ;;  %v1113_v21 = vrot.slane %v3017_v47, %v3261_v26  ;;  %v1199_v42 = vmul.f32 %v3272_v61, %v1149_v45 }
 0x163   : > { %v1682_v50 = vmax.f32 %v1650_v8, 0.0  ;;  %v1117_v30 = vrot.slane %v3017_v47, %v3264_v46  ;;  %v1206_v48 = vmul.f32 %v3283_v53, %v1145_v23  ;;  %v1207_v4 = vmul.f32 %v3283_v53, %v1149_v45 }
 0x164   : > { %v2481_v54 = vpack.c.bf16 %v1681_v41, %v1673_v39  ;;  %2472 = vmatprep.subr.bf16.mxu0 %v2471_v44  ;;  %v1153_v35 = vrot.slane %v1113_v21, %v3261_v26 }
 0x165   : > { %v2479_v57 = vpack.c.bf16 %v1682_v50, %v1674_v49  ;;  %2474 = vmatpush1.bf16.msra.mxu0 %v2473_v17  ;;  %v1157_v24 = vrot.slane %v1117_v30, %v3261_v26 }
 0x166   : > { %v1184_v40 = vmul.f32 %v3266_v59, %v1153_v35  ;;  %v1192_v45 = vmul.f32 %v3280_v6, %v1153_v35 }
 0x167   : > { %2480 = vmatprep.subr.bf16.mxu1 %v2479_v57  ;;  %v1185_v14 = vmul.f32 %v3266_v59, %v1157_v24 }
 0x168   : > { %2482 = vmatpush1.bf16.msra.mxu1 %v2481_v54  ;;  %2455 = vmatmul.mubr.msk.f32.vlgmr.msra.gmra.mrb[16].mxu0 %vm1692_vm1, %v3335_v63 }
 0x169   : > { %v1491_v27 = vpop.f32.mrb[8].mxu0  ;;  %1902 = vmatprep.mubr.f32.mxu0 %v2725_v1 }
 0x16a   : > { %v1492_v58 = vadd.f32 %v1491_v27, %v1182_v52  ;;  %v1493_v55 = vpop.f32.mrb[9].mxu0  ;;  %v1193_v27 = vmul.f32 %v3280_v6, %v1157_v24 }
 0x16b   : > { %v1494_v5 = vadd.f32 %v1493_v55, %v1183_v33  ;;  %2456 = vmatmul.mubr.msk.f32.vlgmr.msra.gmra.mrb[16].mxu1 %vm1692_vm1, %v3335_v63 }
 0x16c   : > { %1973 = vmatprep.mubr.f32.mxu1 %v2725_v1  ;;  %v1627_v60 = vadd.f32 %v3289_v13, %v1492_v58 }
 0x16d   : > { %v1497_v3 = vpop.f32.mrb[10].mxu0  ;;  %v1628_v12 = vadd.f32 %v3289_v13, %v1494_v5 }
 0x16e   : > { %v1498_v2 = vadd.f32 %v1497_v3, %v1190_v62  ;;  %v1499_v11 = vpop.f32.mrb[11].mxu0  ;;  %v1659_v29 = vmax.f32 %v1627_v60, 0.0  ;;  %v1200_v3 = vmul.f32 %v3272_v61, %v1153_v35 }
 0x16f   : > { %v1500_v28 = vadd.f32 %v1499_v11, %v1191_v7  ;;  %v1660_v51 = vmax.f32 %v1628_v12, 0.0 }
 0x170   : > { %v1635_v20 = vadd.f32 %v3294_v22, %v1498_v2  ;;  %v1201_v2 = vmul.f32 %v3272_v61, %v1157_v24 }
 0x171   : > { %v1636_v19 = vadd.f32 %v3294_v22, %v1500_v28  ;;  %v1503_v1 = vpop.f32.mrb[12].mxu0 }
 0x172   : > { %v1667_v37 = vmax.f32 %v1635_v20, 0.0  ;;  %v1504_v15 = vadd.f32 %v1503_v1, %v1198_v10  ;;  %v1505_v32 = vpop.f32.mrb[13].mxu0 }
 0x173   : > { %v1668_v16 = vmax.f32 %v1636_v19, 0.0  ;;  %v1506_v31 = vadd.f32 %v1505_v32, %v1199_v42  ;;  %v1208_v19 = vmul.f32 %v3283_v53, %v1153_v35  ;;  %v1209_v42 = vmul.f32 %v3283_v53, %v1157_v24 }
 0x174   : > { %v2485_v9 = vpack.c.bf16 %v1667_v37, %v1659_v29  ;;  %v1643_v0 = vadd.f32 %v3311_v56, %v1504_v15 }
 0x175   : > { %v1509_v36 = vpop.f32.mrb[14].mxu0  ;;  %v2483_v43 = vpack.c.bf16 %v1668_v16, %v1660_v51  ;;  %v1644_v34 = vadd.f32 %v3311_v56, %v1506_v31 }
 0x176   : > { %v1510_v47 = vadd.f32 %v1509_v36, %v1206_v48  ;;  %v1511_v46 = vpop.f32.mrb[15].mxu0  ;;  %v1675_v39 = vmax.f32 %v1643_v0, 0.0  ;;  %v3385_v36 = vpop.permute.xlu0 %1689 }
 0x177   : > { %v1512_v25 = vadd.f32 %v1511_v46, %v1207_v4  ;;  %2484 = vmatprep.subr.bf16.mxu0 %v2483_v43  ;;  %v1676_v49 = vmax.f32 %v1644_v34, 0.0 }
 0x178   : > { %v1651_v38 = vadd.f32 %v3317_v18, %v1510_v47  ;;  %2486 = vmatpush1.bf16.msra.mxu0 %v2485_v9 }
 0x179   : > { %v1652_v17 = vadd.f32 %v3317_v18, %v1512_v25 }
 0x17a   : > { %v1580_v8 = vpop.f32.mrb[8].mxu1  ;;  %v1683_v26 = vmax.f32 %v1651_v38, 0.0 }
 0x17b   : > { %v1581_v41 = vadd.f32 %v1580_v8, %v1184_v40  ;;  %v1582_v44 = vpop.f32.mrb[9].mxu1  ;;  %v1684_v50 = vmax.f32 %v1652_v17, 0.0 }
 0x17c   : > { %v1583_v54 = vadd.f32 %v1582_v44, %v1185_v14  ;;  %v2489_v23 = vpack.c.bf16 %v1683_v26, %v1675_v39 }
 0x17d   : > { %v2487_v57 = vpack.c.bf16 %v1684_v50, %v1676_v49  ;;  %v1629_v33 = vadd.f32 %v3289_v13, %v1581_v41 }
 0x17e   : > { %v1586_v52 = vpop.f32.mrb[10].mxu1  ;;  %v1630_v59 = vadd.f32 %v3289_v13, %v1583_v54 }
 0x17f   : > { %v1587_v58 = vadd.f32 %v1586_v52, %v1192_v45  ;;  %v1588_v55 = vpop.f32.mrb[11].mxu1  ;;  %2488 = vmatprep.subr.bf16.mxu0 %v2487_v57  ;;  %v1661_v11 = vmax.f32 %v1629_v33, 0.0 }
 0x180   : > { %v1589_v5 = vadd.f32 %v1588_v55, %v1193_v27  ;;  %2490 = vmatpush1.bf16.msra.mxu0 %v2489_v23  ;;  %v1662_v20 = vmax.f32 %v1630_v59, 0.0 }
 0x181   : > { %v1637_v62 = vadd.f32 %v3294_v22, %v1587_v58 }
 0x182   : > { %v1638_v7 = vadd.f32 %v3294_v22, %v1589_v5  ;;  %v1592_v60 = vpop.f32.mrb[12].mxu1 }
 0x183   : > { %v1669_v6 = vmax.f32 %v1637_v62, 0.0  ;;  %v1593_v12 = vadd.f32 %v1592_v60, %v1200_v3  ;;  %v1594_v28 = vpop.f32.mrb[13].mxu1  ;;  %2457 = vmatmul.mubr.msk.f32.vlgmr.msra.gmra.mrb[18].mxu0 %vm1692_vm1, %v3335_v63 }
 0x184   : > { %v1670_v13 = vmax.f32 %v1638_v7, 0.0  ;;  %v1595_v10 = vadd.f32 %v1594_v28, %v1201_v2 }
 0x185   : > { %v2493_v21 = vpack.c.bf16 %v1669_v6, %v1661_v11  ;;  %v1645_v29 = vadd.f32 %v3311_v56, %v1593_v12 }
 0x186   : > { %v1598_v1 = vpop.f32.mrb[14].mxu1  ;;  %v2491_v22 = vpack.c.bf16 %v1670_v13, %v1662_v20  ;;  %v1646_v37 = vadd.f32 %v3311_v56, %v1595_v10 }
 0x187   : > { %v1599_v61 = vadd.f32 %v1598_v1, %v1208_v19  ;;  %v1600_v30 = vpop.f32.mrb[15].mxu1  ;;  %v1677_v16 = vmax.f32 %v1645_v29, 0.0 }
 0x188   : > { %v1601_v15 = vadd.f32 %v1600_v30, %v1209_v42  ;;  %2492 = vmatprep.subr.bf16.mxu1 %v2491_v22  ;;  %v1678_v9 = vmax.f32 %v1646_v37, 0.0 }
 0x189   : > { %v1653_v32 = vadd.f32 %v3317_v18, %v1599_v61  ;;  %2494 = vmatpush1.bf16.msra.mxu1 %v2493_v21 }
 0x18a   : > { %v1654_v51 = vadd.f32 %v3317_v18, %v1601_v15 }
 0x18b   : > { %v1685_v31 = vmax.f32 %v1653_v32, 0.0 }
 0x18c   : > { %v1686_v48 = vmax.f32 %v1654_v51, 0.0 }
 0x18d   : > { %v2497_v35 = vpack.c.bf16 %v1685_v31, %v1677_v16 }
 0x18e   : > { %v2495_v53 = vpack.c.bf16 %v1686_v48, %v1678_v9 }
 0x190   : > { %2496 = vmatprep.subr.bf16.mxu1 %v2495_v53 }
 0x191   : > { %2498 = vmatpush1.bf16.msra.mxu1 %v2497_v35 }
 0x194   : > { %2458 = vmatmul.mubr.msk.f32.vlgmr.msra.gmra.mrb[18].mxu1 %vm1692_vm1, %v3335_v63 }
 0x23b   : > { %v1762_v56 = vpop.f32.mrb[16].mxu0 }
 0x23c   : > { %v1763_v4 = vadd.f32 %v1762_v56, %v3385_v36  ;;  %v1764_v43 = vpop.f32.mrb[17].mxu0 }
 0x23d   : > { %v1765_v18 = vadd.f32 %v1764_v43, %v3385_v36 }
 0x23e   : > { %v2000_v24 = vsel %vm376_vm0, %v1763_v4, -inf  ;;  %v1833_v0 = vpop.f32.mrb[16].mxu1 }
 0x23f   : > { %v2001_v47 = vrot.slane %v2000_v24, 4  ;;  %v1834_v46 = vadd.f32 %v1833_v0, %v3385_v36  ;;  %v1988_v34 = vcombine.low %v1763_v4, %v1765_v18  ;;  %v2007_v25 = vsel %vm376_vm0, %v1765_v18, -inf  ;;  %v1835_v38 = vpop.f32.mrb[17].mxu1 }
 0x240   : > { %v2008_v63 = vrot.slane %v2007_v25, 4  ;;  %v1836_v40 = vadd.f32 %v1835_v38, %v3385_v36 }
 0x241   : > { %v2002_v17 = vmax.f32 %v2000_v24, %v2001_v47  ;;  %v2014_v8 = vsel %vm376_vm0, %v1834_v46, -inf  ;;  %1996 = vst [vmem:[%s3396_s10] sm:$0xff] %v1988_v34 }
 0x242   : > { %v2015_v14 = vrot.slane %v2014_v8, 4  ;;  %v2009_v39 = vmax.f32 %v2007_v25, %v2008_v63  ;;  %v1989_v26 = vcombine.low %v1834_v46, %v1836_v40  ;;  %v2021_v41 = vsel %vm376_vm0, %v1836_v40, -inf }
 0x243   : > { %v2003_v44 = vrot.slane %v2002_v17, 2  ;;  %v2022_v49 = vrot.slane %v2021_v41, 4 }
 0x244   : > { %v2016_v50 = vmax.f32 %v2014_v8, %v2015_v14  ;;  %v2010_v54 = vrot.slane %v2009_v39, 2  ;;  %1997 = vst [vmem:[%s3396_s10 + $0x8] sm:$0xff] %v1989_v26 }
 0x245   : > { %v2004_v23 = vmax.f32 %v2002_v17, %v2003_v44  ;;  %v2023_v45 = vmax.f32 %v2021_v41, %v2022_v49 }
 0x246   : > { %v2017_v57 = vrot.slane %v2016_v50, 2  ;;  %v2011_v52 = vmax.f32 %v2009_v39, %v2010_v54 }
 0x247   : > { %v2005_v27 = vrot.slane %v2004_v23, 1  ;;  %v2024_v33 = vrot.slane %v2023_v45, 2 }
 0x248   : > { %v2018_v58 = vmax.f32 %v2016_v50, %v2017_v57  ;;  %v2012_v55 = vrot.slane %v2011_v52, 1 }
 0x249   : > { %v2006_v59 = vmax.f32 %v2004_v23, %v2005_v27  ;;  %v2025_v5 = vmax.f32 %v2023_v45, %v2024_v33 }
 0x24a   : > { %v2019_v62 = vrot.slane %v2018_v58, 1  ;;  %v2013_v3 = vmax.f32 %v2011_v52, %v2012_v55 }
 0x24b   : > { %v3401_v7 = vsub.f32 %v1763_v4, %v2006_v59  ;;  %v2026_v60 = vrot.slane %v2025_v5, 1 }
 0x24c   : > { %v2020_v2 = vmax.f32 %v2018_v58, %v2019_v62  ;;  %v3403_v11 = vsub.f32 %v1765_v18, %v2013_v3 }
 0x24d   : > { %v2064_v6 = vmul.f32 1.442695, %v3401_v7  ;;  %v2027_v12 = vmax.f32 %v2025_v5, %v2026_v60 }
 0x24e   : > { %v3406_v28 = vsub.f32 %v1834_v46, %v2020_v2  ;;  %v2066_v20 = vmul.f32 1.442695, %v3403_v11 }
 0x24f   : > { %2558 = vpow2.f32 %v2064_v6  ;;  %v3409_v13 = vsub.f32 %v1836_v40, %v2027_v12 }
 0x250   : > { %v2068_v10 = vmul.f32 1.442695, %v3406_v28  ;;  %2560 = vpow2.f32 %v2066_v20 }
 0x251   : > { %v2070_v21 = vmul.f32 1.442695, %v3409_v13 }
 0x252   : > { %2562 = vpow2.f32 %v2068_v10 }
 0x253   : > { %2564 = vpow2.f32 %v2070_v21 }
 0x256   : > { %v1904_v19 = vpop.f32.mrb[18].mxu0 }
 0x257   : > { %v1905_v1 = vadd.f32 %v1904_v19, %v3385_v36  ;;  %v1906_v42 = vpop.f32.mrb[19].mxu0 }
 0x258   : > { %v1907_v22 = vadd.f32 %v1906_v42, %v3385_v36 }
 0x259   : > { %v2559_v29 = vpop.eup %2558  ;;  %v2028_v61 = vsel %vm376_vm0, %v1905_v1, -inf }
 0x25a   : > { %v2561_v30 = vpop.eup %2560  ;;  %v2080_v37 = vsel %vm376_vm0, %v2559_v29, 0.0  ;;  %v2029_v15 = vrot.slane %v2028_v61, 4  ;;  %v1990_v32 = vcombine.low %v1905_v1, %v1907_v22  ;;  %v2035_v51 = vsel %vm376_vm0, %v1907_v22, -inf }
 0x25b   : > { %v2081_v16 = vrot.slane %v2080_v37, 4  ;;  %v2087_v31 = vsel %vm376_vm0, %v2561_v30, 0.0  ;;  %v2036_v9 = vrot.slane %v2035_v51, 4 }
 0x25c   : > { %v2563_v48 = vpop.eup %2562  ;;  %v2088_v35 = vrot.slane %v2087_v31, 4  ;;  %v2030_v53 = vmax.f32 %v2028_v61, %v2029_v15  ;;  %1998 = vst [vmem:[%s3396_s10 + $0x10] sm:$0xff] %v1990_v32 }
 0x25d   : > { %v2565_v56 = vpop.eup %2564  ;;  %v2082_v4 = vadd.f32 %v2081_v16, %v2080_v37  ;;  %v2094_v43 = vsel %vm376_vm0, %v2563_v48, 0.0  ;;  %v2037_v18 = vmax.f32 %v2035_v51, %v2036_v9 }
 0x25e   : > { %v2095_v24 = vrot.slane %v2094_v43, 4  ;;  %v2089_v0 = vadd.f32 %v2088_v35, %v2087_v31  ;;  %v2101_v47 = vsel %vm376_vm0, %v2565_v56, 0.0  ;;  %v2031_v46 = vrot.slane %v2030_v53, 2 }
 0x25f   : > { %v2083_v34 = vrot.slane %v2082_v4, 2  ;;  %v2102_v25 = vrot.slane %v2101_v47, 4  ;;  %v2038_v38 = vrot.slane %v2037_v18, 2 }
 0x260   : > { %v2096_v63 = vadd.f32 %v2095_v24, %v2094_v43  ;;  %v2090_v40 = vrot.slane %v2089_v0, 2  ;;  %v2032_v17 = vmax.f32 %v2030_v53, %v2031_v46 }
 0x261   : > { %v2084_v8 = vadd.f32 %v2083_v34, %v2082_v4  ;;  %v2103_v14 = vadd.f32 %v2102_v25, %v2101_v47  ;;  %v2039_v39 = vmax.f32 %v2037_v18, %v2038_v38 }
 0x262   : > { %v2097_v26 = vrot.slane %v2096_v63, 2  ;;  %v2091_v41 = vadd.f32 %v2090_v40, %v2089_v0  ;;  %v2033_v44 = vrot.slane %v2032_v17, 1 }
 0x263   : > { %v2085_v49 = vrot.slane %v2084_v8, 1  ;;  %v2104_v50 = vrot.slane %v2103_v14, 2  ;;  %v2040_v54 = vrot.slane %v2039_v39, 1 }
 0x264   : > { %v2098_v23 = vadd.f32 %v2097_v26, %v2096_v63  ;;  %v2092_v45 = vrot.slane %v2091_v41, 1  ;;  %v2034_v57 = vmax.f32 %v2032_v17, %v2033_v44 }
 0x265   : > { %v2086_v52 = vadd.f32 %v2085_v49, %v2084_v8  ;;  %v2105_v27 = vadd.f32 %v2104_v50, %v2103_v14  ;;  %v2041_v33 = vmax.f32 %v2039_v39, %v2040_v54 }
 0x266   : > { %v2099_v58 = vrot.slane %v2098_v23, 1  ;;  %v2093_v55 = vadd.f32 %v2092_v45, %v2091_v41  ;;  %v3422_v59 = vsub.f32 %v1905_v1, %v2034_v57  ;;  %v2591_v45 = vld [vmem:[%s2905_s23 + $0x8] sm:$0xff] }
 0x267   : > { %2566 = vlog2.f32 %v2086_v52  ;;  %v2106_v5 = vrot.slane %v2105_v27, 1  ;;  %v1975_v62 = vpop.f32.mrb[18].mxu1  ;;  %v3424_v3 = vsub.f32 %v1907_v22, %v2041_v33 }
 0x268   : > { %v2100_v60 = vadd.f32 %v2099_v58, %v2098_v23  ;;  %2568 = vlog2.f32 %v2093_v55  ;;  %v2072_v2 = vmul.f32 1.442695, %v3422_v59  ;;  %v1976_v6 = vadd.f32 %v1975_v62, %v3385_v36  ;;  %v1977_v12 = vpop.f32.mrb[19].mxu1 }
 0x269   : > { %v2107_v20 = vadd.f32 %v2106_v5, %v2105_v27  ;;  %v2074_v10 = vmul.f32 1.442695, %v3424_v3  ;;  %v1978_v21 = vadd.f32 %v1977_v12, %v3385_v36 }
 0x26a   : > { %2570 = vlog2.f32 %v2100_v60  ;;  %v2042_v19 = vsel %vm376_vm0, %v1976_v6, -inf }
 0x26b   : > { %2572 = vlog2.f32 %v2107_v20  ;;  %v2043_v1 = vrot.slane %v2042_v19, 4  ;;  %v1991_v42 = vcombine.low %v1976_v6, %v1978_v21  ;;  %v2049_v22 = vsel %vm376_vm0, %v1978_v21, -inf }
 0x26c   : > { %2574 = vpow2.f32 %v2072_v2  ;;  %v2050_v29 = vrot.slane %v2049_v22, 4 }
 0x26d   : > { %v2044_v61 = vmax.f32 %v2042_v19, %v2043_v1  ;;  %2576 = vpow2.f32 %v2074_v10  ;;  %1999 = vst [vmem:[%s3396_s10 + $0x18] sm:$0xff] %v1991_v42 }
 0x26e   : > { %v2051_v30 = vmax.f32 %v2049_v22, %v2050_v29 }
 0x26f   : > { %v2045_v37 = vrot.slane %v2044_v61, 2 }
 0x270   : > { %v2052_v15 = vrot.slane %v2051_v30, 2 }
 0x271   : > { %v2567_v32 = vpop.eup %2566  ;;  %v2046_v51 = vmax.f32 %v2044_v61, %v2045_v37 }
 0x272   : > { %v2569_v16 = vpop.eup %2568  ;;  %v2137_v36 = vmul.f32 0.6931472, %v2567_v32  ;;  %v2053_v31 = vmax.f32 %v2051_v30, %v2052_v15 }
 0x273   : > { %v2139_v9 = vmul.f32 0.6931472, %v2569_v16  ;;  %v2047_v48 = vrot.slane %v2046_v51, 1 }
 0x274   : > { %v2571_v35 = vpop.eup %2570  ;;  %v2152_v53 = vsub.f32 %v3401_v7, %v2137_v36  ;;  %v2054_v56 = vrot.slane %v2053_v31, 1 }
 0x275   : > { %v2573_v4 = vpop.eup %2572  ;;  %v2141_v43 = vmul.f32 0.6931472, %v2571_v35  ;;  %v2153_v18 = vsub.f32 %v3403_v11, %v2139_v9  ;;  %v2048_v24 = vmax.f32 %v2046_v51, %v2047_v48  ;;  %v2590_v11 = vld [vmem:[%s2905_s23] sm:$0xff] }
 0x276   : > { %v2575_v0 = vpop.eup %2574  ;;  %v2143_v47 = vmul.f32 0.6931472, %v2573_v4  ;;  %v2055_v46 = vmax.f32 %v2053_v31, %v2054_v56 }
 0x277   : > { %v2577_v34 = vpop.eup %2576  ;;  %v2154_v25 = vsub.f32 %v3406_v28, %v2141_v43  ;;  %v2168_v38 = vcombine.low %v2152_v53, %v2153_v18  ;;  %v2108_v63 = vsel %vm376_vm0, %v2575_v0, 0.0  ;;  %v3437_v40 = vsub.f32 %v1976_v6, %v2048_v24 }
 0x278   : > { %v2155_v7 = vsub.f32 %v3409_v13, %v2143_v47  ;;  %v2109_v17 = vrot.slane %v2108_v63, 4  ;;  %v2115_v8 = vsel %vm376_vm0, %v2577_v34, 0.0  ;;  %v3441_v14 = vsub.f32 %v1978_v21, %v2055_v46 }
 0x279   : > { %v2176_v39 = vmul.f32 %v2590_v11, %v2168_v38  ;;  %v2076_v26 = vmul.f32 1.442695, %v3437_v40  ;;  %v2116_v41 = vrot.slane %v2115_v8, 4 }
 0x27a   : > { %v2169_v44 = vcombine.low %v2154_v25, %v2155_v7  ;;  %v2110_v28 = vadd.f32 %v2109_v17, %v2108_v63  ;;  %v2078_v49 = vmul.f32 1.442695, %v3441_v14 }
 0x27b   : > { %v2184_v50 = vcombine.high %v2176_v39, %v2176_v39  ;;  %v2192_v54 = vsel %vm376_vm0, %v2176_v39, 0.0  ;;  %2578 = vpow2.f32 %v2076_v26  ;;  %v2117_v13 = vadd.f32 %v2116_v41, %v2115_v8 }
 0x27c   : > { %v2193_v23 = vrot.slane %v2192_v54, 4  ;;  %v2177_v57 = vmul.f32 %v2591_v45, %v2169_v44  ;;  %v2111_v52 = vrot.slane %v2110_v28, 2  ;;  %2580 = vpow2.f32 %v2078_v49 }
 0x27d   : > { %v2199_v27 = vsel %vm376_vm0, %v2184_v50, 0.0  ;;  %v2118_v33 = vrot.slane %v2117_v13, 2 }
 0x27e   : > { %v2194_v58 = vadd.f32 %v2193_v23, %v2192_v54  ;;  %v2200_v55 = vrot.slane %v2199_v27, 4  ;;  %v2185_v5 = vcombine.high %v2177_v57, %v2177_v57  ;;  %v2206_v62 = vsel %vm376_vm0, %v2177_v57, 0.0 }
 0x27f   : > { %v2207_v60 = vrot.slane %v2206_v62, 4  ;;  %v2112_v2 = vadd.f32 %v2111_v52, %v2110_v28  ;;  %v2119_v6 = vadd.f32 %v2118_v33, %v2117_v13 }
 0x280   : > { %v2195_v12 = vrot.slane %v2194_v58, 2  ;;  %v2201_v20 = vadd.f32 %v2200_v55, %v2199_v27  ;;  %v2213_v10 = vsel %vm376_vm0, %v2185_v5, 0.0  ;;  %v2592_v5 = vld [vmem:[%s2905_s23 + $0x10] sm:$0xff] }
 0x281   : > { %v2208_v21 = vadd.f32 %v2207_v60, %v2206_v62  ;;  %v2214_v19 = vrot.slane %v2213_v10, 4  ;;  %v2113_v1 = vrot.slane %v2112_v2, 1  ;;  %v2120_v42 = vrot.slane %v2119_v6, 1 }
 0x282   : > { %v2196_v22 = vadd.f32 %v2195_v12, %v2194_v58  ;;  %v2202_v29 = vrot.slane %v2201_v20, 2 }
 0x283   : > { %v2209_v61 = vrot.slane %v2208_v21, 2  ;;  %v2114_v30 = vadd.f32 %v2113_v1, %v2112_v2  ;;  %v2121_v37 = vadd.f32 %v2120_v42, %v2119_v6  ;;  %v2215_v15 = vadd.f32 %v2214_v19, %v2213_v10 }
 0x284   : > { %v2197_v32 = vrot.slane %v2196_v22, 1  ;;  %v2203_v51 = vadd.f32 %v2202_v29, %v2201_v20 }
 0x285   : > { %v2579_v16 = vpop.eup %2578  ;;  %2582 = vlog2.f32 %v2114_v30  ;;  %v2210_v36 = vadd.f32 %v2209_v61, %v2208_v21  ;;  %v2216_v31 = vrot.slane %v2215_v15, 2 }
 0x286   : > { %v2581_v9 = vpop.eup %2580  ;;  %v2122_v48 = vsel %vm376_vm0, %v2579_v16, 0.0  ;;  %2584 = vlog2.f32 %v2121_v37  ;;  %v2198_v35 = vadd.f32 %v2197_v32, %v2196_v22  ;;  %v2204_v53 = vrot.slane %v2203_v51, 1 }
 0x287   : > { %v2123_v56 = vrot.slane %v2122_v48, 4  ;;  %v2129_v4 = vsel %vm376_vm0, %v2581_v9, 0.0  ;;  %v2211_v43 = vrot.slane %v2210_v36, 1  ;;  %v2217_v18 = vadd.f32 %v2216_v31, %v2215_v15 }
 0x288   : > { %v2130_v24 = vrot.slane %v2129_v4, 4  ;;  %v2205_v0 = vadd.f32 %v2204_v53, %v2203_v51  ;;  %v2248_v38 = vsub.f32 0.0, %v2198_v35 }
 0x289   : > { %v2124_v47 = vadd.f32 %v2123_v56, %v2122_v48  ;;  %v2212_v46 = vadd.f32 %v2211_v43, %v2210_v36  ;;  %v2218_v34 = vrot.slane %v2217_v18, 1  ;;  %v2593_v36 = vld [vmem:[%s2905_s23 + $0x18] sm:$0xff] }
 0x28a   : > { %v2131_v25 = vadd.f32 %v2130_v24, %v2129_v4  ;;  %v2249_v63 = vsub.f32 0.0, %v2205_v0 }
 0x28b   : > { %v2125_v7 = vrot.slane %v2124_v47, 2  ;;  %v2219_v17 = vadd.f32 %v2218_v34, %v2217_v18  ;;  %v2250_v11 = vsub.f32 0.0, %v2212_v46 }
 0x28c   : > { %v2132_v8 = vrot.slane %v2131_v25, 2  ;;  %v2256_v39 = vadd.f32 %v2249_v63, %v2248_v38 }
 0x28d   : > { %v2126_v26 = vadd.f32 %v2125_v7, %v2124_v47  ;;  %v2251_v44 = vsub.f32 0.0, %v2219_v17 }
 0x28e   : > { %v2133_v41 = vadd.f32 %v2132_v8, %v2131_v25  ;;  %v2257_v28 = vadd.f32 %v2256_v39, %v2250_v11 }
 0x28f   : > { %v2583_v49 = vpop.eup %2582  ;;  %v2127_v50 = vrot.slane %v2126_v26, 1 }
 0x290   : > { %v2585_v54 = vpop.eup %2584  ;;  %v2145_v13 = vmul.f32 0.6931472, %v2583_v49  ;;  %v2134_v23 = vrot.slane %v2133_v41, 1  ;;  %v2258_v45 = vadd.f32 %v2257_v28, %v2251_v44 }
 0x291   : > { %v2128_v57 = vadd.f32 %v2127_v50, %v2126_v26  ;;  %v2147_v52 = vmul.f32 0.6931472, %v2585_v54 }
 0x292   : > { %v2156_v27 = vsub.f32 %v3422_v59, %v2145_v13  ;;  %v2135_v33 = vadd.f32 %v2134_v23, %v2133_v41 }
 0x293   : > { %2586 = vlog2.f32 %v2128_v57  ;;  %v2157_v58 = vsub.f32 %v3424_v3, %v2147_v52 }
 0x294   : > { %2588 = vlog2.f32 %v2135_v33 }
 0x295   : > { %v2170_v55 = vcombine.low %v2156_v27, %v2157_v58 }
 0x297   : > { %v2178_v62 = vmul.f32 %v2592_v5, %v2170_v55 }
 0x299   : > { %v2186_v60 = vcombine.high %v2178_v62, %v2178_v62  ;;  %v2220_v2 = vsel %vm376_vm0, %v2178_v62, 0.0 }
 0x29a   : > { %v2221_v6 = vrot.slane %v2220_v2, 4 }
 0x29b   : > { %v2227_v12 = vsel %vm376_vm0, %v2186_v60, 0.0 }
 0x29c   : > { %v2222_v20 = vadd.f32 %v2221_v6, %v2220_v2  ;;  %v2228_v10 = vrot.slane %v2227_v12, 4 }
 0x29d   : > { %v2587_v21 = vpop.eup %2586 }
 0x29e   : > { %v2589_v19 = vpop.eup %2588  ;;  %v2149_v59 = vmul.f32 0.6931472, %v2587_v21  ;;  %v2223_v1 = vrot.slane %v2222_v20, 2  ;;  %v2229_v42 = vadd.f32 %v2228_v10, %v2227_v12 }
 0x29f   : > { %v2151_v22 = vmul.f32 0.6931472, %v2589_v19 }
 0x2a0   : > { %v2158_v3 = vsub.f32 %v3437_v40, %v2149_v59  ;;  %v2224_v29 = vadd.f32 %v2223_v1, %v2222_v20  ;;  %v2230_v61 = vrot.slane %v2229_v42, 2 }
 0x2a1   : > { %v2159_v30 = vsub.f32 %v3441_v14, %v2151_v22 }
 0x2a2   : > { %v2225_v37 = vrot.slane %v2224_v29, 1  ;;  %v2231_v15 = vadd.f32 %v2230_v61, %v2229_v42 }
 0x2a3   : > { %v2171_v32 = vcombine.low %v2158_v3, %v2159_v30 }
 0x2a4   : > { %v2226_v51 = vadd.f32 %v2225_v37, %v2224_v29  ;;  %v2232_v16 = vrot.slane %v2231_v15, 1 }
 0x2a5   : > { %v2179_v31 = vmul.f32 %v2593_v36, %v2171_v32 }
 0x2a6   : > { %v2233_v9 = vadd.f32 %v2232_v16, %v2231_v15  ;;  %v2252_v48 = vsub.f32 0.0, %v2226_v51 }
 0x2a7   : > { %v2187_v35 = vcombine.high %v2179_v31, %v2179_v31  ;;  %v2234_v53 = vsel %vm376_vm0, %v2179_v31, 0.0 }
 0x2a8   : > { %v2235_v56 = vrot.slane %v2234_v53, 4  ;;  %v2253_v4 = vsub.f32 0.0, %v2233_v9  ;;  %v2259_v43 = vadd.f32 %v2258_v45, %v2252_v48 }
 0x2a9   : > { %v2241_v40 = vsel %vm376_vm0, %v2187_v35, 0.0 }
 0x2aa   : > { %v2236_v18 = vadd.f32 %v2235_v56, %v2234_v53  ;;  %v2242_v24 = vrot.slane %v2241_v40, 4  ;;  %v2260_v14 = vadd.f32 %v2259_v43, %v2253_v4 }
 0x2ac   : > { %v2237_v0 = vrot.slane %v2236_v18, 2  ;;  %v2243_v47 = vadd.f32 %v2242_v24, %v2241_v40 }
 0x2ae   : > { %v2238_v46 = vadd.f32 %v2237_v0, %v2236_v18  ;;  %v2244_v34 = vrot.slane %v2243_v47, 2 }
 0x2b0   : > { %v2239_v25 = vrot.slane %v2238_v46, 1  ;;  %v2245_v38 = vadd.f32 %v2244_v34, %v2243_v47 }
 0x2b2   : > { %v2240_v63 = vadd.f32 %v2239_v25, %v2238_v46  ;;  %v2246_v7 = vrot.slane %v2245_v38, 1 }
 0x2b4   : > { %v2247_v17 = vadd.f32 %v2246_v7, %v2245_v38  ;;  %v2254_v8 = vsub.f32 0.0, %v2240_v63 }
 0x2b6   : > { %v2255_v11 = vsub.f32 0.0, %v2247_v17  ;;  %v2261_v39 = vadd.f32 %v2260_v14, %v2254_v8 }
 0x2b8   : > { %v2262_v26 = vadd.f32 %v2261_v39, %v2255_v11 }
 0x2ba   : > { %2263 = vadd.xlane.f32.xlu1 %v2262_v26 }
 0x2bb   : > { %2637 = shalt.err (!%p2634_p5)
}
 0x2bc   : > { %s2638_s12 = scalar_lea.hbm %s3467_s25, 512  ;;  %s2642_s23 = scalar_lea.hbm %s3544_s7, 1024 }
 0x2bd   : > { %p2639_p8 = scmp.ne.s32.totalorder %s3467_s25, %s2638_s12  ;;  %p2643_p1 = scmp.lt.u32.totalorder %s3467_s25, %s3544_s7 }
 0x2be   : > { %p2644_p3 = scmp.lt.u32.totalorder %s2642_s23, %s2638_s12  ;;  %p2646_p6 = scmp.lt.u32.totalorder %s2638_s12, %s3467_s25 }
 0x2bf   : > { %p2640_p9 = pnand %p2639_p8, %p3554_p12 }
 0x2c0   : > { %p2645_p11 = por %p2644_p3, %p2643_p1 }
 0x2c1   : > { %p2641_p0 = pneg %p2640_p9 }
 0x2c2   : > { %p2647_p13 = por %p2646_p6, %p2645_p11 }
 0x2c4   : > { %p2648_p7 = pnand %p2647_p13, %p2641_p0 }
 0x2c6   : > { %2651 = shalt.err (!%p2648_p7)
}
 0x2c7   : > { %2501 = dma.vmem_to_hbm [thread:$0]  (%p3554_p12), %s2286_s15, 512, %s3467_s25, %s2267_s20  }
 0x2c8   : > { %s347_s22 = scalar_lea.vmem [#allocation6], %s2879_s13  ;;  %s2462_s26 = sshll.u32 %s2795_s9, 4 }
 0x2c9   : > { %s2298_s16 = sshll.u32 %s347_s22, 4  ;;  %s3495_s12 = scalar_lea.hbm %s3545_s8, %s2462_s26  ;;  %s3490_s16 = int_to_ptr.vmem [resolvable:$true] %s2298_s16 }
 0x2ca   : > { %s2272_s23 = scalar_lea.sflag [#allocation7], %s2879_s13  ;;  %s2652_s19 = scalar_lea.vmem %s3490_s16, 16 }
 0x2cb   : > { %p2653_p10 = scmp.ne.s32.totalorder %s3490_s16, %s2652_s19  ;;  %s2728_s25 = smov [#allocation6]  }
 0x2cc   : > { %s2656_s9 = sshll.u32 %s2728_s25, 4  ;;  %s2657_s9 = int_to_ptr.vmem [resolvable:$false] %s2656_s9 }
 0x2cd   : > { %p2654_p2 = pnand %p2653_p10, %p3554_p12  ;;  %s2658_s15 = scalar_lea.vmem %s2657_s9, 32 }
 0x2ce   : > { %p2659_p5 = scmp.lt.s32.totalorder %s3490_s16, %s2657_s9  ;;  %p2660_p8 = scmp.lt.s32.totalorder %s2658_s15, %s2652_s19 }
 0x2cf   : > { %p2655_p4 = pneg %p2654_p2 }
 0x2d0   : > { %p2661_p9 = por %p2660_p8, %p2659_p5 }
 0x2d2   : > { %p2662_p0 = pnand %p2661_p9, %p2655_p4 }
 0x347   : > { %v2264_v41 = vpop.xlane.xlu1 %2263 }
 0x348   : > { %2265 = vst [vmem:[%s347_s22] sm:$0x1] %v2264_v41 }
 0x349   : > { %2665 = shalt.err (!%p2662_p0)
}
 0x34a   : > { %s2666_s13 = scalar_lea.hbm %s3495_s12, 16  ;;  %s2670_s22 = scalar_lea.hbm %s3545_s8, 32 }
 0x34b   : > { %p2667_p1 = scmp.ne.s32.totalorder %s3495_s12, %s2666_s13  ;;  %p2671_p6 = scmp.lt.u32.totalorder %s3495_s12, %s3545_s8 }
 0x34c   : > { %p2672_p13 = scmp.lt.u32.totalorder %s2670_s22, %s2666_s13  ;;  %p2674_p10 = scmp.lt.u32.totalorder %s2666_s13, %s3495_s12 }
 0x34d   : > { %p2668_p3 = pnand %p2667_p1, %p3554_p12 }
 0x34e   : > { %p2673_p7 = por %p2672_p13, %p2671_p6 }
 0x34f   : > { %p2669_p11 = pneg %p2668_p3 }
 0x350   : > { %p2675_p2 = por %p2674_p10, %p2673_p7 }
 0x352   : > { %p2676_p4 = pnand %p2675_p2, %p2669_p11 }
 0x354   : > { %2679 = shalt.err (!%p2676_p4)
}
 0x355   : > { %2502 = dma.vmem_to_hbm [thread:$0]  (%p3554_p12), %s3490_s16, 16, %s3495_s12, %s2272_s23  }
 0x356 PF: > { %s2310_s21 = sand.u32 1, %s2710_s27   ;;  %p3555_p5 = scmp.ne.s32.totalorder %s3550_s18, 0 }
 0x357   : > { %p3556_p8 = scmp.ge.s32.totalorder %s2722_s30, 2  ;;  %s2311_s19 = scalar_lea.sflag [#allocation4], %s2310_s21 }
 0x359   : > { %p2510_p9 = pnand %p3556_p8, %p3555_p5 }
 0x35b   : > { %2701 = dma.done.wait (!%p2510_p9), %s2311_s19, 512  }
 0x35c   : > { %2703 = vsyncadd (!%p2510_p9), %s2311_s19, 4294966784  ;;  %s2320_s25 = scalar_lea.sflag [#allocation7], %s2310_s21 }
 0x35d   : > { %2705 = dma.done.wait (!%p2510_p9), %s2320_s25, 16  }
 0x35e   : > { %2707 = vsyncadd (!%p2510_p9), %s2320_s25, 4294967280  ;;  %p25_p12 = scmp.ge.s32.totalorder %s2799_s11, 4   ;;  %s3557_s27 = smov %s2714_s28 }
 0x35f   : > { %s3558_s28 = smov %s2718_s29  ;;  %s3559_s29 = smov %s2811_s14 }
 0x360   : > { %s3560_s30 = smov %s2799_s11  ;;  %27 = sbr.rel (!%p25_p12) target bundleno = 7 (0x7), region = 113 }
 0x367   :  { %2324 = vsyncpa [#allocation3], 1 }
 0x368   :  { %2326 = vsyncpa [#allocation3 + $0x1], 1 }
 0x369   :  { %2327 = vsyncpa [#allocation4], 1 }
 0x36a   :  { %2329 = vsyncpa [#allocation4 + $0x1], 1 }
 0x36b   :  { %2330 = vsyncpa [#allocation7], 1 }
 0x36c   :  { %2332 = vsyncpa [#allocation7 + $0x1], 1 }

</bundles_post_ra>
